<compile_context>
chip_gen: v7x
topology: tpu7x:2x2x1
jax: 0.10.0
libtpu: 0.0.40
codegen_flags: <defaults>
</compile_context>

<pallas_src>
import functools

import jax
import jax.numpy as jnp
from jax.experimental import pallas as pl
from jax.experimental.pallas import tpu as pltpu

BN_EPS = 1e-5          # ModifiedBN2d default eps
LEAKY_SLOPE = 0.01     # nn.LeakyReLU default (ReLU replaced when modified_bn)


def _vmem_limit_bytes():
    """Generation-aware scoped-VMEM budget (~75% of physical, <=100 MiB)."""
    try:
        cap = int(pltpu.get_tpu_info().vmem_capacity_bytes)
    except Exception:
        cap = 64 << 20                     # conservative default (v7x per-TC)
    return max(32 << 20, min(int(0.75 * cap), 100 << 20))


def _pick_tile(hw, cin_pad, cmid, n_cls, budget_bytes):
    """Largest row tile (multiple of 128) dividing HW that fits the budget."""
    cands = [t for t in range(128, hw + 1, 128) if hw % t == 0]
    if not cands:
        # TODO(synk): real 7x7 trunk (HW=49) -> pad rows to 56 + zero-mask.
        return hw

    def per_tile(t):
        lanes = 128
        return (2 * t * max(cin_pad, lanes) * 4        # x tile (double-buffered, lane-padded)
                + t * max(cmid, lanes) * (4 + 2)       # h f32 + h bf16
                + 2 * n_cls * t * 4)                   # cams out tile (double-buffered)

    best = cands[0]
    for t in cands:
        if per_tile(t) <= budget_bytes:
            best = t
    return best


# ----------------------------------------------------------------------------
# Single fused kernel.
#   grid = (N, R_TILES); r (row-tile) axis is the reduction axis for the
#   global average pool; sumh_acc is VMEM scratch carried across r.
# ----------------------------------------------------------------------------
def _fused_kernel(x_ref, w1_ref, b_ref, wcam_ref, whead_ref,
                  probs_ref, cams_ref, sumh_acc, *, cin):
    r = pl.program_id(1)

    @pl.when(r == 0)
    def _init():
        sumh_acc[...] = jnp.zeros_like(sumh_acc)

    # ---- stem: 1x1 conv over tiny Cin as VPU broadcast FMAs (BN already
    #      folded into w1/b in the wrapper), then LeakyReLU.
    x = x_ref[...]                                # (T, Cin_pad) f32
    w1 = w1_ref[...]                              # (Cin_pad, Cmid) f32, BN-folded
    h = x[:, 0:1] * w1[0:1, :]
    for c in range(1, cin):                       # static, unrolled; padded cols unused
        h = h + x[:, c:c + 1] * w1[c:c + 1, :]
    h = h + b_ref[...]                            # folded BN bias (broadcast)
    h = jnp.where(h >= 0, h, LEAKY_SLOPE * h)     # LeakyReLU

    # ---- global-average-pool partial: row-sum of h on the VPU (MXU-free).
    sumh_acc[...] += jnp.sum(h, axis=0, keepdims=True)

    # ---- CAMs (_bp_free_hi_res_cams): (n_cls, T) = W_cam @ h^T, K = Cmid.
    #      W_cam = (wlin @ w3.T) / feat_w^2 was folded in the wrapper (bf16).
    cams = jax.lax.dot_general(wcam_ref[...], h.astype(jnp.bfloat16),
                               (((1,), (1,)), ((), ())),
                               preferred_element_type=jnp.float32)
    cams_ref[0] = cams  # TODO(synk): emit bf16 CAMs if downstream tolerates it.

    # ---- head (once per image): logits = mean(conv3 + downsample) @ wlin.T,
    #      fully folded into sum(h) @ W_head (f32), then Softmax(dim=1).
    @pl.when(r == pl.num_programs(1) - 1)
    def _final():
        logits = jax.lax.dot_general(sumh_acc[...], whead_ref[...],
                                     (((1,), (0,)), ((), ())),
                                     preferred_element_type=jnp.float32)
        m = jnp.max(logits, axis=-1, keepdims=True)
        e = jnp.exp(logits - m)
        probs_ref[0] = e / jnp.sum(e, axis=-1, keepdims=True)


# ----------------------------------------------------------------------------
# Wrapper
# ----------------------------------------------------------------------------
def model_forward(x_nchw, params, *, weight_buffering=True):
    N, Cin, H, W = x_nchw.shape
    Cmid = params["w1"].shape[1]
    n_cls = params["wlin"].shape[0]
    HW = H * W

    # ---- fold everything foldable into wrapper-side (f32) weights ----------
    scale = params["bn_gamma"] * jax.lax.rsqrt(params["bn_var"] + BN_EPS)   # (1, Cmid)
    w1_eff = params["w1"] * scale                                           # (Cin, Cmid)
    b_eff = params["bn_beta"] - params["bn_mean"] * scale                   # (1, Cmid)

    feat_w = W   # stride-1 surrogate: feature-map width == input width
    # TODO(synk): real stride-32 trunk -> feat_w = 7 (feature_rect.shape[-1]).
    w_cam = ((params["wlin"] @ params["w3"].T) / float(feat_w * feat_w)
             ).astype(jnp.bfloat16)                                         # (n_cls, Cmid)
    w_head = ((params["w3"] + params["wds"]) @ params["wlin"].T) / float(HW)  # (Cmid, n_cls)

    # Pad the tiny Cin to a full sublane group for DMA friendliness; the
    # padded columns/rows are never touched by the unrolled FMA loop.
    cin_pad = max(8, ((Cin + 7) // 8) * 8)
    x_rows = jnp.transpose(x_nchw, (0, 2, 3, 1)).reshape(N * HW, Cin)
    x_rows = jnp.pad(x_rows, ((0, 0), (0, cin_pad - Cin)))
    w1_eff = jnp.pad(w1_eff, ((0, cin_pad - Cin), (0, 0)))

    vmem_limit = _vmem_limit_bytes()
    TILE = _pick_tile(HW, cin_pad, Cmid, n_cls, budget_bytes=vmem_limit // 2)
    assert HW % TILE == 0, "row tile must divide HW"
    assert TILE % 8 == 0 or N == 1, \
        "row tile must be sublane (8) aligned; pad HW for odd feature maps"
    R_TILES = HW // TILE

    kernel = functools.partial(_fused_kernel, cin=Cin)

    use_buffered = weight_buffering and hasattr(pl, "Buffered")

    def const_spec(shape):
        kw = {"pipeline_mode": pl.Buffered(1)} if use_buffered else {}
        return pl.BlockSpec(shape, lambda n, r: (0,) * len(shape), **kw)

    probs3, cams_flat = pl.pallas_call(
        kernel,
        out_shape=(jax.ShapeDtypeStruct((N, 1, n_cls), jnp.float32),
                   jax.ShapeDtypeStruct((N, n_cls, HW), jnp.float32)),
        grid_spec=pltpu.PrefetchScalarGridSpec(
            num_scalar_prefetch=0,
            grid=(N, R_TILES),
            in_specs=[
                pl.BlockSpec((TILE, cin_pad), lambda n, r: (n * R_TILES + r, 0)),
                const_spec((cin_pad, Cmid)),   # w1_eff (BN folded, f32)
                const_spec((1, Cmid)),         # b_eff  (f32)
                const_spec((n_cls, Cmid)),     # W_cam  (bf16)
                const_spec((Cmid, n_cls)),     # W_head (f32)
            ],
            out_specs=(
                pl.BlockSpec((1, 1, n_cls), lambda n, r: (n, 0, 0)),     # probs
                pl.BlockSpec((1, n_cls, TILE), lambda n, r: (n, 0, r)),  # cams
            ),
            scratch_shapes=[pltpu.VMEM((1, Cmid), jnp.float32)],         # row-sum of h
        ),
        compiler_params=pltpu.CompilerParams(
            dimension_semantics=("parallel", "arbitrary"),
            vmem_limit_bytes=vmem_limit),
    )(x_rows, w1_eff, b_eff, w_cam, w_head)

    probs = probs3.reshape(N, n_cls)
    cams = cams_flat.reshape(N, n_cls, H, W)     # free reshape, no transpose
    return probs, cams


# ----------------------------------------------------------------------------
# Pure-JAX reference (same surrogate backbone, un-folded f32 math).
# ----------------------------------------------------------------------------
def reference_forward(x_nchw, params):
    N, Cin, H, W = x_nchw.shape
    x = jnp.transpose(x_nchw, (0, 2, 3, 1)).reshape(N * H * W, Cin)
    h = x @ params["w1"]
    h = ((h - params["bn_mean"]) / jnp.sqrt(params["bn_var"] + BN_EPS)
         * params["bn_gamma"] + params["bn_beta"])
    h = jnp.where(h >= 0, h, LEAKY_SLOPE * h)
    feat = h @ params["w3"]
    idres = h @ params["wds"]
    Cfeat = feat.shape[-1]
    out_map = (feat + idres).reshape(N, H * W, Cfeat)
    pooled = out_map.mean(axis=1)
    logits = pooled @ params["wlin"].T
    probs = jax.nn.softmax(logits, axis=1)
    featm = feat.reshape(N, H * W, Cfeat)
    cams = jnp.einsum("kc,nsc->nks", params["wlin"], featm) / float(W * W)
    cams = cams.reshape(N, -1, H, W)
    return probs, cams


if __name__ == "__main__":
    key = jax.random.PRNGKey(0)
    N, Cin, H, W = 2, 3, 16, 16          # small NCHW input
    Cmid, Cfeat, n_cls = 64, 256, 16     # small stand-ins for 512/2048/N_CLASSES
    ks = jax.random.split(key, 9)

    x = jax.random.normal(ks[0], (N, Cin, H, W), jnp.float32)
    params = {
        "w1":       0.2 * jax.random.normal(ks[1], (Cin, Cmid), jnp.float32),
        "bn_gamma": 1.0 + 0.1 * jax.random.normal(ks[2], (1, Cmid), jnp.float32),
        "bn_beta":  0.1 * jax.random.normal(ks[3], (1, Cmid), jnp.float32),
        "bn_mean":  0.1 * jax.random.normal(ks[4], (1, Cmid), jnp.float32),
        "bn_var":   0.5 + jnp.abs(jax.random.normal(ks[5], (1, Cmid), jnp.float32)),
        "w3":       0.1 * jax.random.normal(ks[6], (Cmid, Cfeat), jnp.float32),
        "wds":      0.1 * jax.random.normal(ks[7], (Cmid, Cfeat), jnp.float32),
        "wlin":     0.05 * jax.random.normal(ks[8], (n_cls, Cfeat), jnp.float32),
    }

    fwd = jax.jit(functools.partial(model_forward, weight_buffering=True))
    try:
        probs, cams = jax.block_until_ready(fwd(x, params))
    except Exception:
        # Fallback for jax versions without BlockSpec(pipeline_mode=Buffered(1)).
        fwd = jax.jit(functools.partial(model_forward, weight_buffering=False))
        probs, cams = jax.block_until_ready(fwd(x, params))

    ref_probs, ref_cams = reference_forward(x, params)

    assert probs.shape == (N, n_cls)
    assert cams.shape == (N, n_cls, H, W)
    assert jnp.allclose(probs, ref_probs, rtol=5e-2, atol=5e-2)
    assert jnp.allclose(cams, ref_cams, rtol=5e-2, atol=5e-2)

    print("KERNEL_OK")
</pallas_src>

<mosaic_0001>
module attributes {stable_mosaic.version = 11 : i64} {
  func.func @_fused_kernel(%arg0: i32, %arg1: i32, %arg2: memref<256x8xf32, #tpu.memory_space<vmem>>, %arg3: memref<8x64xf32, #tpu.memory_space<vmem>>, %arg4: memref<1x64xf32, #tpu.memory_space<vmem>>, %arg5: memref<16x64xbf16, #tpu.memory_space<vmem>>, %arg6: memref<64x16xf32, #tpu.memory_space<vmem>>, %arg7: memref<1x1x16xf32, #tpu.memory_space<vmem>>, %arg8: memref<1x16x256xf32, #tpu.memory_space<vmem>>, %arg9: memref<1x64xf32, #tpu.memory_space<vmem>>) attributes {dimension_semantics = [#tpu.dimension_semantics<parallel>, #tpu.dimension_semantics<arbitrary>], iteration_bounds = array<i64: 2, 1>, scalar_prefetch = 0 : i64, scratch_operands = 1 : i64, tpu.core_type = #tpu.core_type<tc>, window_params = [{transform_indices = @transform_0, window_bounds = array<i64: 256, 8>}, {pipeline_mode = #tpu.pipeline_mode<synchronous>, transform_indices = @transform_1, window_bounds = array<i64: 8, 64>}, {pipeline_mode = #tpu.pipeline_mode<synchronous>, transform_indices = @transform_2, window_bounds = array<i64: 1, 64>}, {pipeline_mode = #tpu.pipeline_mode<synchronous>, transform_indices = @transform_3, window_bounds = array<i64: 16, 64>}, {pipeline_mode = #tpu.pipeline_mode<synchronous>, transform_indices = @transform_4, window_bounds = array<i64: 64, 16>}, {transform_indices = @transform_5, window_bounds = array<i64: 1, 1, 16>}, {transform_indices = @transform_6, window_bounds = array<i64: 1, 16, 256>}]} {
    %c0_i32 = arith.constant 0 : i32
    %0 = arith.cmpi eq, %arg1, %c0_i32 : i32
    %1 = arith.extui %0 : i1 to i32
    %c0_i32_0 = arith.constant 0 : i32
    %2 = arith.cmpi ne, %1, %c0_i32_0 : i32
    scf.if %2 {
      %cst_20 = arith.constant 0.000000e+00 : f32
      %44 = vector.broadcast %cst_20 : f32 to vector<1x64xf32>
      %c0_21 = arith.constant 0 : index
      %c0_22 = arith.constant 0 : index
      %45 = vector.load %arg9[%c0_21, %c0_22] : memref<1x64xf32, #tpu.memory_space<vmem>>, vector<1x64xf32>
      tpu.vector_store %arg9[%c0_21, %c0_22], %44 {strides = array<i32>} : memref<1x64xf32, #tpu.memory_space<vmem>>, vector<1x64xf32>,
    } else {
    }
    %c0 = arith.constant 0 : index
    %c0_1 = arith.constant 0 : index
    %3 = vector.load %arg2[%c0, %c0_1] : memref<256x8xf32, #tpu.memory_space<vmem>>, vector<256x8xf32>
    %c0_2 = arith.constant 0 : index
    %c0_3 = arith.constant 0 : index
    %4 = vector.load %arg3[%c0_2, %c0_3] : memref<8x64xf32, #tpu.memory_space<vmem>>, vector<8x64xf32>
    %5 = vector.extract_strided_slice %3 {offsets = [0, 0], sizes = [256, 1], strides = [1, 1]} : vector<256x8xf32> to vector<256x1xf32>
    %6 = vector.extract_strided_slice %4 {offsets = [0, 0], sizes = [1, 64], strides = [1, 1]} : vector<8x64xf32> to vector<1x64xf32>
    %7 = vector.broadcast %5 : vector<256x1xf32> to vector<256x64xf32>
    %8 = vector.broadcast %6 : vector<1x64xf32> to vector<256x64xf32>
    %9 = arith.mulf %7, %8 : vector<256x64xf32>
    %10 = vector.extract_strided_slice %3 {offsets = [0, 1], sizes = [256, 1], strides = [1, 1]} : vector<256x8xf32> to vector<256x1xf32>
    %11 = vector.extract_strided_slice %4 {offsets = [1, 0], sizes = [1, 64], strides = [1, 1]} : vector<8x64xf32> to vector<1x64xf32>
    %12 = vector.broadcast %10 : vector<256x1xf32> to vector<256x64xf32>
    %13 = vector.broadcast %11 : vector<1x64xf32> to vector<256x64xf32>
    %14 = arith.mulf %12, %13 : vector<256x64xf32>
    %15 = arith.addf %9, %14 : vector<256x64xf32>
    %16 = vector.extract_strided_slice %3 {offsets = [0, 2], sizes = [256, 1], strides = [1, 1]} : vector<256x8xf32> to vector<256x1xf32>
    %17 = vector.extract_strided_slice %4 {offsets = [2, 0], sizes = [1, 64], strides = [1, 1]} : vector<8x64xf32> to vector<1x64xf32>
    %18 = vector.broadcast %16 : vector<256x1xf32> to vector<256x64xf32>
    %19 = vector.broadcast %17 : vector<1x64xf32> to vector<256x64xf32>
    %20 = arith.mulf %18, %19 : vector<256x64xf32>
    %21 = arith.addf %15, %20 : vector<256x64xf32>
    %c0_4 = arith.constant 0 : index
    %c0_5 = arith.constant 0 : index
    %22 = vector.load %arg4[%c0_4, %c0_5] : memref<1x64xf32, #tpu.memory_space<vmem>>, vector<1x64xf32>
    %23 = vector.broadcast %22 : vector<1x64xf32> to vector<256x64xf32>
    %24 = arith.addf %21, %23 : vector<256x64xf32>
    %cst = arith.constant 0.000000e+00 : f32
    %25 = vector.broadcast %cst : f32 to vector<256x64xf32>
    %26 = arith.cmpf oge, %24, %25 : vector<256x64xf32>
    %cst_6 = arith.constant 0.00999999977 : f32
    %27 = vector.broadcast %cst_6 : f32 to vector<256x64xf32>
    %28 = arith.mulf %27, %24 : vector<256x64xf32>
    %29 = arith.select %26, %24, %28 : vector<256x64xi1>, vector<256x64xf32>
    %c0_7 = arith.constant 0 : index
    %c0_8 = arith.constant 0 : index
    %30 = vector.load %arg9[%c0_7, %c0_8] : memref<1x64xf32, #tpu.memory_space<vmem>>, vector<1x64xf32>
    %cst_9 = arith.constant dense<0.000000e+00> : vector<64xf32>
    %31 = vector.multi_reduction <add>, %29, %cst_9 [0] : vector<256x64xf32> to vector<64xf32>
    %32 = vector.shape_cast %31 : vector<64xf32> to vector<1x64xf32>
    %33 = arith.addf %30, %32 : vector<1x64xf32>
    %c0_10 = arith.constant 0 : index
    %c0_11 = arith.constant 0 : index
    %34 = vector.load %arg9[%c0_10, %c0_11] : memref<1x64xf32, #tpu.memory_space<vmem>>, vector<1x64xf32>
    tpu.vector_store %arg9[%c0_10, %c0_11], %33 {strides = array<i32>} : memref<1x64xf32, #tpu.memory_space<vmem>>, vector<1x64xf32>,
    %c0_12 = arith.constant 0 : index
    %c0_13 = arith.constant 0 : index
    %35 = vector.load %arg5[%c0_12, %c0_13] : memref<16x64xbf16, #tpu.memory_space<vmem>>, vector<16x64xbf16>
    %36 = arith.truncf %29 : vector<256x64xf32> to vector<256x64xbf16>
    %cst_14 = arith.constant dense<0.000000e+00> : vector<16x256xf32>
    %37 = tpu.matmul %35, %36, %cst_14 {dimension_numbers = #tpu.dot_dimension_numbers<[1], [1], [0], [0], [0, 0, 1, 0], [], []>} : vector<16x64xbf16>, vector<256x64xbf16>, vector<16x256xf32> -> vector<16x256xf32>
    %c0_15 = arith.constant 0 : index
    %c0_16 = arith.constant 0 : index
    %c0_17 = arith.constant 0 : index
    %38 = vector.load %arg8[%c0_15, %c0_16, %c0_17] : memref<1x16x256xf32, #tpu.memory_space<vmem>>, vector<1x16x256xf32>
    %39 = vector.shape_cast %38 : vector<1x16x256xf32> to vector<16x256xf32>
    %40 = vector.shape_cast %37 : vector<16x256xf32> to vector<1x16x256xf32>
    tpu.vector_store %arg8[%c0_15, %c0_16, %c0_17], %40 {strides = array<i32>} : memref<1x16x256xf32, #tpu.memory_space<vmem>>, vector<1x16x256xf32>,
    %c0_i32_18 = arith.constant 0 : i32
    %41 = arith.cmpi eq, %arg1, %c0_i32_18 : i32
    %42 = arith.extui %41 : i1 to i32
    %c0_i32_19 = arith.constant 0 : i32
    %43 = arith.cmpi ne, %42, %c0_i32_19 : i32
    scf.if %43 {
      %c0_20 = arith.constant 0 : index
      %c0_21 = arith.constant 0 : index
      %44 = vector.load %arg9[%c0_20, %c0_21] : memref<1x64xf32, #tpu.memory_space<vmem>>, vector<1x64xf32>
      %c0_22 = arith.constant 0 : index
      %c0_23 = arith.constant 0 : index
      %45 = vector.load %arg6[%c0_22, %c0_23] : memref<64x16xf32, #tpu.memory_space<vmem>>, vector<64x16xf32>
      %cst_24 = arith.constant dense<0.000000e+00> : vector<1x16xf32>
      %46 = tpu.matmul %44, %45, %cst_24 {dimension_numbers = #tpu.dot_dimension_numbers<[1], [0], [0], [1], [0, 0, 1, 1], [], []>} : vector<1x64xf32>, vector<64x16xf32>, vector<1x16xf32> -> vector<1x16xf32>
      %cst_25 = arith.constant dense<0xFF800000> : vector<1xf32>
      %47 = vector.multi_reduction <maximumf>, %46, %cst_25 [1] : vector<1x16xf32> to vector<1xf32>
      %48 = vector.shape_cast %47 : vector<1xf32> to vector<1x1xf32>
      %49 = vector.broadcast %48 : vector<1x1xf32> to vector<1x16xf32>
      %50 = arith.subf %46, %49 : vector<1x16xf32>
      %51 = math.exp %50 : vector<1x16xf32>
      %cst_26 = arith.constant dense<0.000000e+00> : vector<1xf32>
      %52 = vector.multi_reduction <add>, %51, %cst_26 [1] : vector<1x16xf32> to vector<1xf32>
      %53 = vector.shape_cast %52 : vector<1xf32> to vector<1x1xf32>
      %54 = vector.broadcast %53 : vector<1x1xf32> to vector<1x16xf32>
      %55 = arith.divf %51, %54 : vector<1x16xf32>
      %c0_27 = arith.constant 0 : index
      %c0_28 = arith.constant 0 : index
      %c0_29 = arith.constant 0 : index
      %56 = vector.load %arg7[%c0_27, %c0_28, %c0_29] : memref<1x1x16xf32, #tpu.memory_space<vmem>>, vector<1x1x16xf32>
      %57 = vector.shape_cast %56 : vector<1x1x16xf32> to vector<1x16xf32>
      %58 = vector.shape_cast %55 : vector<1x16xf32> to vector<1x1x16xf32>
      tpu.vector_store %arg7[%c0_27, %c0_28, %c0_29], %58 {strides = array<i32>} : memref<1x1x16xf32, #tpu.memory_space<vmem>>, vector<1x1x16xf32>,
    } else {
    }
    return
  }
  func.func @transform_0(%arg0: i32, %arg1: i32) -> (i32, i32) {
    %c1_i32 = arith.constant 1 : i32
    %0 = arith.muli %arg0, %c1_i32 : i32
    %1 = arith.addi %0, %arg1 : i32
    %c0_i32 = arith.constant 0 : i32
    %c0_i32_0 = arith.constant 0 : i32
    return %1, %c0_i32 : i32, i32
  }
  func.func @transform_1(%arg0: i32, %arg1: i32) -> (i32, i32) {
    %c0_i32 = arith.constant 0 : i32
    %c0_i32_0 = arith.constant 0 : i32
    %c0_i32_1 = arith.constant 0 : i32
    return %c0_i32, %c0_i32_0 : i32, i32
  }
  func.func @transform_2(%arg0: i32, %arg1: i32) -> (i32, i32) {
    %c0_i32 = arith.constant 0 : i32
    %c0_i32_0 = arith.constant 0 : i32
    %c0_i32_1 = arith.constant 0 : i32
    return %c0_i32, %c0_i32_0 : i32, i32
  }
  func.func @transform_3(%arg0: i32, %arg1: i32) -> (i32, i32) {
    %c0_i32 = arith.constant 0 : i32
    %c0_i32_0 = arith.constant 0 : i32
    %c0_i32_1 = arith.constant 0 : i32
    return %c0_i32, %c0_i32_0 : i32, i32
  }
  func.func @transform_4(%arg0: i32, %arg1: i32) -> (i32, i32) {
    %c0_i32 = arith.constant 0 : i32
    %c0_i32_0 = arith.constant 0 : i32
    %c0_i32_1 = arith.constant 0 : i32
    return %c0_i32, %c0_i32_0 : i32, i32
  }
  func.func @transform_5(%arg0: i32, %arg1: i32) -> (i32, i32, i32) {
    %c0_i32 = arith.constant 0 : i32
    %c0_i32_0 = arith.constant 0 : i32
    %c0_i32_1 = arith.constant 0 : i32
    return %arg0, %c0_i32, %c0_i32_0 : i32, i32, i32
  }
  func.func @transform_6(%arg0: i32, %arg1: i32) -> (i32, i32, i32) {
    %c0_i32 = arith.constant 0 : i32
    %c0_i32_0 = arith.constant 0 : i32
    return %arg0, %c0_i32, %arg1 : i32, i32, i32
  }
}

module attributes {stable_mosaic.version = 11 : i64} {
  func.func @_fused_kernel(%arg0: i32, %arg1: i32, %arg2: memref<256x8xf32, #tpu.memory_space<vmem>>, %arg3: memref<8x64xf32, #tpu.memory_space<vmem>>, %arg4: memref<1x64xf32, #tpu.memory_space<vmem>>, %arg5: memref<16x64xbf16, #tpu.memory_space<vmem>>, %arg6: memref<64x16xf32, #tpu.memory_space<vmem>>, %arg7: memref<1x1x16xf32, #tpu.memory_space<vmem>>, %arg8: memref<1x16x256xf32, #tpu.memory_space<vmem>>, %arg9: memref<1x64xf32, #tpu.memory_space<vmem>>) attributes {dimension_semantics = [#tpu.dimension_semantics<parallel>, #tpu.dimension_semantics<arbitrary>], iteration_bounds = array<i64: 2, 1>, scalar_prefetch = 0 : i64, scratch_operands = 1 : i64, tpu.core_type = #tpu.core_type<tc>, window_params = [{transform_indices = @transform_0, window_bounds = array<i64: 256, 8>}, {pipeline_mode = #tpu.pipeline_mode<synchronous>, transform_indices = @transform_1, window_bounds = array<i64: 8, 64>}, {pipeline_mode = #tpu.pipeline_mode<synchronous>, transform_indices = @transform_2, window_bounds = array<i64: 1, 64>}, {pipeline_mode = #tpu.pipeline_mode<synchronous>, transform_indices = @transform_3, window_bounds = array<i64: 16, 64>}, {pipeline_mode = #tpu.pipeline_mode<synchronous>, transform_indices = @transform_4, window_bounds = array<i64: 64, 16>}, {transform_indices = @transform_5, window_bounds = array<i64: 1, 1, 16>}, {transform_indices = @transform_6, window_bounds = array<i64: 1, 16, 256>}]} {
    %c0_i32 = arith.constant 0 : i32
    %0 = arith.cmpi eq, %arg1, %c0_i32 : i32
    %1 = arith.extui %0 : i1 to i32
    %c0_i32_0 = arith.constant 0 : i32
    %2 = arith.cmpi ne, %1, %c0_i32_0 : i32
    scf.if %2 {
      %cst_20 = arith.constant 0.000000e+00 : f32
      %44 = vector.broadcast %cst_20 : f32 to vector<1x64xf32>
      %c0_21 = arith.constant 0 : index
      %c0_22 = arith.constant 0 : index
      %45 = vector.load %arg9[%c0_21, %c0_22] : memref<1x64xf32, #tpu.memory_space<vmem>>, vector<1x64xf32>
      tpu.vector_store %arg9[%c0_21, %c0_22], %44 {strides = array<i32>} : memref<1x64xf32, #tpu.memory_space<vmem>>, vector<1x64xf32>,
    } else {
    }
    %c0 = arith.constant 0 : index
    %c0_1 = arith.constant 0 : index
    %3 = vector.load %arg2[%c0, %c0_1] : memref<256x8xf32, #tpu.memory_space<vmem>>, vector<256x8xf32>
    %c0_2 = arith.constant 0 : index
    %c0_3 = arith.constant 0 : index
    %4 = vector.load %arg3[%c0_2, %c0_3] : memref<8x64xf32, #tpu.memory_space<vmem>>, vector<8x64xf32>
    %5 = vector.extract_strided_slice %3 {offsets = [0, 0], sizes = [256, 1], strides = [1, 1]} : vector<256x8xf32> to vector<256x1xf32>
    %6 = vector.extract_strided_slice %4 {offsets = [0, 0], sizes = [1, 64], strides = [1, 1]} : vector<8x64xf32> to vector<1x64xf32>
    %7 = vector.broadcast %5 : vector<256x1xf32> to vector<256x64xf32>
    %8 = vector.broadcast %6 : vector<1x64xf32> to vector<256x64xf32>
    %9 = arith.mulf %7, %8 : vector<256x64xf32>
    %10 = vector.extract_strided_slice %3 {offsets = [0, 1], sizes = [256, 1], strides = [1, 1]} : vector<256x8xf32> to vector<256x1xf32>
    %11 = vector.extract_strided_slice %4 {offsets = [1, 0], sizes = [1, 64], strides = [1, 1]} : vector<8x64xf32> to vector<1x64xf32>
    %12 = vector.broadcast %10 : vector<256x1xf32> to vector<256x64xf32>
    %13 = vector.broadcast %11 : vector<1x64xf32> to vector<256x64xf32>
    %14 = arith.mulf %12, %13 : vector<256x64xf32>
    %15 = arith.addf %9, %14 : vector<256x64xf32>
    %16 = vector.extract_strided_slice %3 {offsets = [0, 2], sizes = [256, 1], strides = [1, 1]} : vector<256x8xf32> to vector<256x1xf32>
    %17 = vector.extract_strided_slice %4 {offsets = [2, 0], sizes = [1, 64], strides = [1, 1]} : vector<8x64xf32> to vector<1x64xf32>
    %18 = vector.broadcast %16 : vector<256x1xf32> to vector<256x64xf32>
    %19 = vector.broadcast %17 : vector<1x64xf32> to vector<256x64xf32>
    %20 = arith.mulf %18, %19 : vector<256x64xf32>
    %21 = arith.addf %15, %20 : vector<256x64xf32>
    %c0_4 = arith.constant 0 : index
    %c0_5 = arith.constant 0 : index
    %22 = vector.load %arg4[%c0_4, %c0_5] : memref<1x64xf32, #tpu.memory_space<vmem>>, vector<1x64xf32>
    %23 = vector.broadcast %22 : vector<1x64xf32> to vector<256x64xf32>
    %24 = arith.addf %21, %23 : vector<256x64xf32>
    %cst = arith.constant 0.000000e+00 : f32
    %25 = vector.broadcast %cst : f32 to vector<256x64xf32>
    %26 = arith.cmpf oge, %24, %25 : vector<256x64xf32>
    %cst_6 = arith.constant 0.00999999977 : f32
    %27 = vector.broadcast %cst_6 : f32 to vector<256x64xf32>
    %28 = arith.mulf %27, %24 : vector<256x64xf32>
    %29 = arith.select %26, %24, %28 : vector<256x64xi1>, vector<256x64xf32>
    %c0_7 = arith.constant 0 : index
    %c0_8 = arith.constant 0 : index
    %30 = vector.load %arg9[%c0_7, %c0_8] : memref<1x64xf32, #tpu.memory_space<vmem>>, vector<1x64xf32>
    %cst_9 = arith.constant dense<0.000000e+00> : vector<64xf32>
    %31 = vector.multi_reduction <add>, %29, %cst_9 [0] : vector<256x64xf32> to vector<64xf32>
    %32 = vector.shape_cast %31 : vector<64xf32> to vector<1x64xf32>
    %33 = arith.addf %30, %32 : vector<1x64xf32>
    %c0_10 = arith.constant 0 : index
    %c0_11 = arith.constant 0 : index
    %34 = vector.load %arg9[%c0_10, %c0_11] : memref<1x64xf32, #tpu.memory_space<vmem>>, vector<1x64xf32>
    tpu.vector_store %arg9[%c0_10, %c0_11], %33 {strides = array<i32>} : memref<1x64xf32, #tpu.memory_space<vmem>>, vector<1x64xf32>,
    %c0_12 = arith.constant 0 : index
    %c0_13 = arith.constant 0 : index
    %35 = vector.load %arg5[%c0_12, %c0_13] : memref<16x64xbf16, #tpu.memory_space<vmem>>, vector<16x64xbf16>
    %36 = arith.truncf %29 : vector<256x64xf32> to vector<256x64xbf16>
    %cst_14 = arith.constant dense<0.000000e+00> : vector<16x256xf32>
    %37 = tpu.matmul %35, %36, %cst_14 {dimension_numbers = #tpu.dot_dimension_numbers<[1], [1], [0], [0], [0, 0, 1, 0], [], []>} : vector<16x64xbf16>, vector<256x64xbf16>, vector<16x256xf32> -> vector<16x256xf32>
    %c0_15 = arith.constant 0 : index
    %c0_16 = arith.constant 0 : index
    %c0_17 = arith.constant 0 : index
    %38 = vector.load %arg8[%c0_15, %c0_16, %c0_17] : memref<1x16x256xf32, #tpu.memory_space<vmem>>, vector<1x16x256xf32>
    %39 = vector.shape_cast %38 : vector<1x16x256xf32> to vector<16x256xf32>
    %40 = vector.shape_cast %37 : vector<16x256xf32> to vector<1x16x256xf32>
    tpu.vector_store %arg8[%c0_15, %c0_16, %c0_17], %40 {strides = array<i32>} : memref<1x16x256xf32, #tpu.memory_space<vmem>>, vector<1x16x256xf32>,
    %c0_i32_18 = arith.constant 0 : i32
    %41 = arith.cmpi eq, %arg1, %c0_i32_18 : i32
    %42 = arith.extui %41 : i1 to i32
    %c0_i32_19 = arith.constant 0 : i32
    %43 = arith.cmpi ne, %42, %c0_i32_19 : i32
    scf.if %43 {
      %c0_20 = arith.constant 0 : index
      %c0_21 = arith.constant 0 : index
      %44 = vector.load %arg9[%c0_20, %c0_21] : memref<1x64xf32, #tpu.memory_space<vmem>>, vector<1x64xf32>
      %c0_22 = arith.constant 0 : index
      %c0_23 = arith.constant 0 : index
      %45 = vector.load %arg6[%c0_22, %c0_23] : memref<64x16xf32, #tpu.memory_space<vmem>>, vector<64x16xf32>
      %cst_24 = arith.constant dense<0.000000e+00> : vector<1x16xf32>
      %46 = tpu.matmul %44, %45, %cst_24 {dimension_numbers = #tpu.dot_dimension_numbers<[1], [0], [0], [1], [0, 0, 1, 1], [], []>} : vector<1x64xf32>, vector<64x16xf32>, vector<1x16xf32> -> vector<1x16xf32>
      %cst_25 = arith.constant dense<0xFF800000> : vector<1xf32>
      %47 = vector.multi_reduction <maximumf>, %46, %cst_25 [1] : vector<1x16xf32> to vector<1xf32>
      %48 = vector.shape_cast %47 : vector<1xf32> to vector<1x1xf32>
      %49 = vector.broadcast %48 : vector<1x1xf32> to vector<1x16xf32>
      %50 = arith.subf %46, %49 : vector<1x16xf32>
      %51 = math.exp %50 : vector<1x16xf32>
      %cst_26 = arith.constant dense<0.000000e+00> : vector<1xf32>
      %52 = vector.multi_reduction <add>, %51, %cst_26 [1] : vector<1x16xf32> to vector<1xf32>
      %53 = vector.shape_cast %52 : vector<1xf32> to vector<1x1xf32>
      %54 = vector.broadcast %53 : vector<1x1xf32> to vector<1x16xf32>
      %55 = arith.divf %51, %54 : vector<1x16xf32>
      %c0_27 = arith.constant 0 : index
      %c0_28 = arith.constant 0 : index
      %c0_29 = arith.constant 0 : index
      %56 = vector.load %arg7[%c0_27, %c0_28, %c0_29] : memref<1x1x16xf32, #tpu.memory_space<vmem>>, vector<1x1x16xf32>
      %57 = vector.shape_cast %56 : vector<1x1x16xf32> to vector<1x16xf32>
      %58 = vector.shape_cast %55 : vector<1x16xf32> to vector<1x1x16xf32>
      tpu.vector_store %arg7[%c0_27, %c0_28, %c0_29], %58 {strides = array<i32>} : memref<1x1x16xf32, #tpu.memory_space<vmem>>, vector<1x1x16xf32>,
    } else {
    }
    return
  }
  func.func @transform_0(%arg0: i32, %arg1: i32) -> (i32, i32) {
    %c1_i32 = arith.constant 1 : i32
    %0 = arith.muli %arg0, %c1_i32 : i32
    %1 = arith.addi %0, %arg1 : i32
    %c0_i32 = arith.constant 0 : i32
    %c0_i32_0 = arith.constant 0 : i32
    return %1, %c0_i32 : i32, i32
  }
  func.func @transform_1(%arg0: i32, %arg1: i32) -> (i32, i32) {
    %c0_i32 = arith.constant 0 : i32
    %c0_i32_0 = arith.constant 0 : i32
    %c0_i32_1 = arith.constant 0 : i32
    return %c0_i32, %c0_i32_0 : i32, i32
  }
  func.func @transform_2(%arg0: i32, %arg1: i32) -> (i32, i32) {
    %c0_i32 = arith.constant 0 : i32
    %c0_i32_0 = arith.constant 0 : i32
    %c0_i32_1 = arith.constant 0 : i32
    return %c0_i32, %c0_i32_0 : i32, i32
  }
  func.func @transform_3(%arg0: i32, %arg1: i32) -> (i32, i32) {
    %c0_i32 = arith.constant 0 : i32
    %c0_i32_0 = arith.constant 0 : i32
    %c0_i32_1 = arith.constant 0 : i32
    return %c0_i32, %c0_i32_0 : i32, i32
  }
  func.func @transform_4(%arg0: i32, %arg1: i32) -> (i32, i32) {
    %c0_i32 = arith.constant 0 : i32
    %c0_i32_0 = arith.constant 0 : i32
    %c0_i32_1 = arith.constant 0 : i32
    return %c0_i32, %c0_i32_0 : i32, i32
  }
  func.func @transform_5(%arg0: i32, %arg1: i32) -> (i32, i32, i32) {
    %c0_i32 = arith.constant 0 : i32
    %c0_i32_0 = arith.constant 0 : i32
    %c0_i32_1 = arith.constant 0 : i32
    return %arg0, %c0_i32, %c0_i32_0 : i32, i32, i32
  }
  func.func @transform_6(%arg0: i32, %arg1: i32) -> (i32, i32, i32) {
    %c0_i32 = arith.constant 0 : i32
    %c0_i32_0 = arith.constant 0 : i32
    return %arg0, %c0_i32, %arg1 : i32, i32, i32
  }
}

</mosaic_0001>

<bundles_post_ra>
// kernel: model_forward.1
= control target key start
LH: loop header
LB: loop body
LE: loop exit
PB: predicated region body
PF: predicated region fallthrough
CT: control target
= control target key end

     0   :  { %12 = vsyncpa [#allocation4], 0  ;;  %s2472_s0 = inlined_call_operand.vmem [shape: f32[512,8], index: 0, kind: input, shape index: {}]   ;;  %s2473_s1 = inlined_call_operand.vmem [shape: f32[8,64], index: 1, kind: input, shape index: {}]   ;;  %s2474_s2 = inlined_call_operand.vmem [shape: f32[1,64], index: 2, kind: input, shape index: {}]   ;;  %s2475_s3 = inlined_call_operand.vmem [shape: bf16[16,64], index: 3, kind: input, shape index: {}]   ;;  %s2476_s4 = inlined_call_operand.vmem [shape: f32[64,16], index: 4, kind: input, shape index: {}]   ;;  %s2477_s5 = inlined_call_operand.hbm [shape: f32[2,1,16], index: 5, kind: output, shape index: {0}]   ;;  %s2478_s6 = inlined_call_operand.vmem [shape: f32[2,16,256], index: 6, kind: output, shape index: {1}]  }
   0x1   :  { %14 = vsyncpa [#allocation4 + $0x1], 0  ;;  %s1808_s21 = smov 0   ;;  %s1810_s22 = smov 0  }
   0x2   :  { %s1812_s23 = smov 0   ;;  %s1814_s24 = smov 0  }
   0x3   :  { %s1816_s25 = smov 0   ;;  %s1818_s26 = smov 0  }
   0x4 LB: > { %s1476_s27 = sadd.s32 4294967295, %s1764_s26   ;;  %s1477_s28 = sadd.s32 4294967294, %s1764_s26   ;;  %s1764_s26 = sphi %s1818_s26, %s20_s26   ;;  %s1760_s25 = sphi %s1816_s25, %s2485_s25   ;;  %s1756_s24 = sphi %s1814_s24, %s2484_s24   ;;  %s1752_s23 = sphi %s1812_s23, %s2483_s23   ;;  %s1748_s22 = sphi %s1810_s22, %s2482_s22   ;;  %s1744_s21 = sphi %s1808_s21, %s2481_s21  }
   0x5   : > { %s32_s29 = sadd.s32 1, %s1760_s25  ;;  %s151_s30 = sadd.s32 1, %s1752_s23 }
   0x6   : > { %p34_p0 = scmp.ge.s32.totalorder %s32_s29, 2  ;;  %p161_p1 = scmp.ne.s32.totalorder %s1752_s23, %s1748_s22 }
   0x7   : > { %p162_p2 = scmp.eq.s32.totalorder %s1476_s27, 1  ;;  %p167_p3 = scmp.ne.s32.totalorder %s1748_s22, %s1744_s21 }
   0x8   : > { %s2487_s29 = smov (%p34_p0, %s32_s29), 0  ;;  %p168_p5 = scmp.eq.s32.totalorder %s1477_s28, 1 }
   0x9   : > { %p1848_p4 = por %p162_p2, %p161_p1  ;;  %s148_s8 = ssub.s32 %s1760_s25, %s2487_s29 }
   0xa   : > { %p1480_p6 = scmp.ge.s32.totalorder %s1764_s26, 1  ;;  %p149_p7 = scmp.eq.s32.totalorder %s148_s8, 0 }
   0xb   : > { %p1855_p8 = por %p168_p5, %p167_p3  ;;  %p237_p9 = scmp.lt.s32.totalorder %s1764_s26, 3 }
   0xc   : > { %s1861_s10 = scalar_select %p149_p7, %s1752_s23, %s151_s30  }
   0xd   : > { %p238_p10 = pnand %p1480_p6, %p237_p9 }
   0xe   : > { %s1481_s11 = sshll.u32 (!%p238_p10), %s1756_s24, 5  ;;  %v1766_v0 = vmov (!%p238_p10), 1   ;;  %v1767_v1 = vmov (!%p238_p10), 0   ;;  %v1768_v6 = vmov (!%p238_p10), 2   ;;  %v494_v30 = vlaneseq (!%p238_p10)  ;;  %v333_v38 = vld [vmem:[%s2473_s1] sm:$0xff] (!%p238_p10)  ;;  %p285_p12 = scmp.lt.s32.totalorder (!%p238_p10), %s1756_s24, 1 }
   0xf   : > { %241 = sbr.rel (%p238_p10) target bundleno = 1006 (0x3ee), region = 40  ;;  %1621 = vset.pattern.permute.xlu1 (!%p238_p10), %v1766_v0  ;;  %1620 = vset.pattern.permute.xlu0 (!%p238_p10), %v1767_v1  ;;  %p278_p11 = scmp.lt.s32.totalorder (!%p238_p10), %s1481_s11, 63  ;;  %v2002_v54 = vld [vmem:[%s2474_s2] ss:$0 sm:$0xff] (!%p238_p10)  ;;  %vm1058_vm1 = vcmask (!%p238_p10), 523264  }
  0x10   : > { %v495_v31 = vshrl.u32 (!%p238_p10), %v494_v30, 7  ;;  %s263_s17 = sand.u32 (!%p238_p10), 1, %s1748_s22   ;;  %s1489_s18 = sshll.u32 (!%p238_p10), %s1756_s24, 4 }
  0x11   : > { %s264_s19 = scalar_lea.vmem (!%p238_p10), [#allocation3], %s263_s17  ;;  %s2424_s30 = scalar_lea.hbm (!%p238_p10), %s2477_s5, %s1489_s18 }
  0x12   : > { %v660_v34 = vsub.s32 (!%p238_p10), 1, %v495_v31  ;;  %v496_v35 = vsub.s32 (!%p238_p10), 0, %v495_v31  ;;  %v856_v39 = vsub.s32 (!%p238_p10), 2, %v495_v31  ;;  %s1372_s20 = sshll.u32 (!%p238_p10), %s264_s19, 4  ;;  %s1351_s8 = scalar_lea.sflag (!%p238_p10), [#allocation4], %s263_s17  ;;  %s2426_s20 = int_to_ptr.vmem [resolvable:$true] %s1372_s20 }
  0x14   : > { %v1979_v40 = vrot.slane (!%p238_p10), %v333_v38, %v660_v34  ;;  %v1981_v41 = vrot.slane (!%p238_p10), %v333_v38, %v496_v35  ;;  %v1987_v46 = vrot.slane (!%p238_p10), %v333_v38, %v856_v39 }
  0x16   : > { %s2489_s11 = smov (!%p278_p11, %s1481_s11), 63 }
  0x17   : > { %s1482_s12 = sshll.u32 %s2489_s11, 3  ;;  %s1686_s11 = scalar_lea.vmem %s2426_s20, 16 }
  0x18   : > { %s1869_s15 = scalar_lea.vmem %s2472_s0, %s1482_s12  ;;  %p1687_p13 = scmp.ne.s32.totalorder %s2426_s20, %s1686_s11 }
  0x19   : > { %v301_v2 = vld [vmem:[%s1869_s15] sm:$0xff]  ;;  %v302_v3 = vld [vmem:[%s1869_s15 + $0x8] sm:$0xff]  ;;  %v303_v4 = vld [vmem:[%s1869_s15 + $0x10] sm:$0xff]  ;;  %s286_s12 = scalar_select %p285_p12, %s1756_s24, 1 }
  0x1a   : > { %531 = vperm.xlu1 %1621, %v301_v2   ;;  %336 = vperm.xlu0 %1620, %v301_v2   ;;  %v306_v5 = vld [vmem:[%s1869_s15 + $0x28] sm:$0xff]  ;;  %v307_v7 = vld [vmem:[%s1869_s15 + $0x30] sm:$0xff]  ;;  %v304_v8 = vld [vmem:[%s1869_s15 + $0x18] sm:$0xff]  ;;  %p1688_p0 = pnand %p1687_p13, %p1848_p4  ;;  %s1772_s24 = smov [#allocation3]  }
  0x1b   : > { %v305_v9 = vld [vmem:[%s1869_s15 + $0x20] sm:$0xff]  ;;  %v1884_v10 = vld [vmem:[%s1869_s15 + $0x50] sm:$0xff]  ;;  %v1889_v11 = vld [vmem:[%s1869_s15 + $0x58] sm:$0xff]  ;;  %s1492_s13 = sshll.u32 %s286_s12, 5  ;;  %s1690_s12 = sshll.u32 %s1772_s24, 4  ;;  %s1691_s12 = int_to_ptr.vmem [resolvable:$false] %s1690_s12 }
  0x1c   : > { %v1894_v12 = vld [vmem:[%s1869_s15 + $0x78] sm:$0xff]  ;;  %v1899_v13 = vld [vmem:[%s1869_s15 + $0x80] sm:$0xff]  ;;  %v1909_v16 = vld [vmem:[%s1869_s15 + $0xa8] sm:$0xff]  ;;  %s292_s16 = scalar_lea.vmem %s2478_s6, %s1492_s13  ;;  %p1689_p1 = pneg %p1688_p0 }
  0x1d   : > { %v1903_v14 = vld [vmem:[%s1869_s15 + $0xa0] sm:$0xff]  ;;  %v308_v15 = vld [vmem:[%s1869_s15 + $0x38] sm:$0xff]  ;;  %v1914_v17 = vld [vmem:[%s1869_s15 + $0xc8] sm:$0xff]  ;;  %s1692_s13 = scalar_lea.vmem %s1691_s12, 32  ;;  %p1693_p2 = scmp.lt.s32.totalorder %s2426_s20, %s1691_s12 }
  0x1e   : > { %535 = vperm.xlu1 %1621, %v302_v3   ;;  %341 = vperm.xlu0 %1620, %v302_v3   ;;  %v1919_v18 = vld [vmem:[%s1869_s15 + $0xd0] sm:$0xff]  ;;  %v309_v19 = vld [vmem:[%s1869_s15 + $0x40] sm:$0xff]  ;;  %v310_v20 = vld [vmem:[%s1869_s15 + $0x48] sm:$0xff]  ;;  %p1694_p3 = scmp.lt.s32.totalorder %s1692_s13, %s1686_s11 }
  0x1f   : > { %v314_v21 = vld [vmem:[%s1869_s15 + $0x68] sm:$0xff]  ;;  %v315_v22 = vld [vmem:[%s1869_s15 + $0x70] sm:$0xff]  ;;  %v1939_v24 = vld [vmem:[%s1869_s15 + $0x98] sm:$0xff] }
  0x20   : > { %v1935_v23 = vld [vmem:[%s1869_s15 + $0x90] sm:$0xff]  ;;  %v313_v25 = vld [vmem:[%s1869_s15 + $0x60] sm:$0xff]  ;;  %v1946_v26 = vld [vmem:[%s1869_s15 + $0xb8] sm:$0xff]  ;;  %p1695_p5 = por %p1694_p3, %p1693_p2 }
  0x21   : > { %v1951_v27 = vld [vmem:[%s1869_s15 + $0xc0] sm:$0xff]  ;;  %v1961_v29 = vld [vmem:[%s1869_s15 + $0xe8] sm:$0xff]  ;;  %v2005_v55 = vld [vmem:[%s1869_s15 + $0xf0] sm:$0xff] }
  0x22   : > { %539 = vperm.xlu1 %1621, %v303_v4   ;;  %346 = vperm.xlu0 %1620, %v303_v4   ;;  %v1956_v28 = vld [vmem:[%s1869_s15 + $0xe0] sm:$0xff]  ;;  %v318_v49 = vld [vmem:[%s1869_s15 + $0x88] sm:$0xff]  ;;  %v2017_v63 = vld [vmem:[%s1869_s15 + $0xf8] sm:$0xff]  ;;  %p1696_p6 = pnand %p1695_p5, %p1689_p1 }
  0x26   : > { %1622 = vset.pattern.permute.xlu1 %v1768_v6  ;;  %361 = vperm.xlu0 %1620, %v306_v5  }
  0x27   : > { %731 = vperm.xlu1 %1622, %v302_v3  }
  0x2a   : > { %366 = vperm.xlu0 %1620, %v307_v7  }
  0x2b   : > { %1623 = vset.pattern.permute.xlu1 %v1767_v1 }
  0x2c   : > { %351 = vperm.xlu1 %1623, %v304_v8  }
  0x2e   : > { %1629 = vset.pattern.permute.xlu0 %v1768_v6 }
  0x2f   : > { %727 = vperm.xlu0 %1629, %v301_v2  }
  0x30   : > { %1624 = vset.pattern.permute.xlu1 %v1768_v6 }
  0x31   : > { %735 = vperm.xlu1 %1624, %v303_v4  }
  0x33   : > { %747 = vperm.xlu0 %1629, %v306_v5  }
  0x35   : > { %1625 = vset.pattern.permute.xlu1 %v1767_v1 }
  0x36   : > { %356 = vperm.xlu1 %1625, %v305_v9  }
  0x37   : > { %751 = vperm.xlu0 %1629, %v307_v7  }
  0x3a   : > { %1626 = vset.pattern.permute.xlu1 %v1768_v6 }
  0x3b   : > { %739 = vperm.xlu1 %1626, %v304_v8   ;;  %767 = vperm.xlu0 %1629, %v1884_v10  }
  0x3f   : > { %1627 = vset.pattern.permute.xlu1 %v1766_v0  ;;  %771 = vperm.xlu0 %1629, %v1889_v11  }
  0x40   : > { %551 = vperm.xlu1 %1627, %v306_v5  }
  0x43   : > { %787 = vperm.xlu0 %1629, %v1894_v12  }
  0x44   : > { %1628 = vset.pattern.permute.xlu1 %v1768_v6 }
  0x45   : > { %743 = vperm.xlu1 %1628, %v305_v9  }
  0x47   : > { %791 = vperm.xlu0 %1629, %v1899_v13  }
  0x49   : > { %1630 = vset.pattern.permute.xlu1 %v1766_v0 }
  0x4a   : > { %555 = vperm.xlu1 %1630, %v307_v7  }
  0x4b   : > { %807 = vperm.xlu0 %1629, %v1903_v14  }
  0x4e   : > { %1631 = vset.pattern.permute.xlu1 %v1767_v1 }
  0x4f   : > { %371 = vperm.xlu1 %1631, %v308_v15   ;;  %811 = vperm.xlu0 %1629, %v1909_v16  }
  0x53   : > { %1632 = vset.pattern.permute.xlu1 %v1766_v0  ;;  %827 = vperm.xlu0 %1629, %v1914_v17  }
  0x54   : > { %559 = vperm.xlu1 %1632, %v308_v15  }
  0x57   : > { %831 = vperm.xlu0 %1629, %v1919_v18  }
  0x58   : > { %1633 = vset.pattern.permute.xlu1 %v1767_v1 }
  0x59   : > { %376 = vperm.xlu1 %1633, %v309_v19  }
  0x5b   : > { %1669 = vset.pattern.permute.xlu0 %v1766_v0 }
  0x5c   : > { %543 = vperm.xlu0 %1669, %v304_v8  }
  0x5d   : > { %1634 = vset.pattern.permute.xlu1 %v1768_v6 }
  0x5e   : > { %755 = vperm.xlu1 %1634, %v308_v15  }
  0x60   : > { %547 = vperm.xlu0 %1669, %v305_v9  }
  0x62   : > { %1635 = vset.pattern.permute.xlu1 %v1767_v1 }
  0x63   : > { %381 = vperm.xlu1 %1635, %v310_v20  }
  0x64   : > { %563 = vperm.xlu0 %1669, %v309_v19  }
  0x67   : > { %1636 = vset.pattern.permute.xlu1 %v1768_v6 }
  0x68   : > { %759 = vperm.xlu1 %1636, %v309_v19   ;;  %567 = vperm.xlu0 %1669, %v310_v20  }
  0x6c   : > { %1637 = vset.pattern.permute.xlu1 %v1766_v0  ;;  %583 = vperm.xlu0 %1669, %v314_v21  }
  0x6d   : > { %571 = vperm.xlu1 %1637, %v1884_v10  }
  0x70   : > { %587 = vperm.xlu0 %1669, %v315_v22  }
  0x71   : > { %1638 = vset.pattern.permute.xlu1 %v1768_v6 }
  0x72   : > { %763 = vperm.xlu1 %1638, %v310_v20  }
  0x74   : > { %603 = vperm.xlu0 %1669, %v1935_v23  }
  0x76   : > { %1639 = vset.pattern.permute.xlu1 %v1766_v0 }
  0x77   : > { %575 = vperm.xlu1 %1639, %v1889_v11  }
  0x78   : > { %607 = vperm.xlu0 %1669, %v1939_v24  }
  0x7b   : > { %1640 = vset.pattern.permute.xlu1 %v1767_v1 }
  0x7c   : > { %396 = vperm.xlu1 %1640, %v313_v25   ;;  %623 = vperm.xlu0 %1669, %v1946_v26  }
  0x80   : > { %1641 = vset.pattern.permute.xlu1 %v1766_v0  ;;  %627 = vperm.xlu0 %1669, %v1951_v27  }
  0x81   : > { %579 = vperm.xlu1 %1641, %v313_v25  }
  0x84   : > { %643 = vperm.xlu0 %1669, %v1956_v28  }
  0x85   : > { %1642 = vset.pattern.permute.xlu1 %v1767_v1 }
  0x86   : > { %401 = vperm.xlu1 %1642, %v314_v21  }
  0x88   : > { %647 = vperm.xlu0 %1669, %v1961_v29  }
  0x8a   : > { %1643 = vset.pattern.permute.xlu1 %v1768_v6 }
  0x8b   : > { %775 = vperm.xlu1 %1643, %v313_v25  }
  0x8c   : > { %1673 = vset.pattern.permute.xlu0 %v1767_v1 }
  0x8d   : > { %386 = vperm.xlu0 %1673, %v1884_v10  }
  0x8f   : > { %1644 = vset.pattern.permute.xlu1 %v1767_v1 }
  0x90   : > { %406 = vperm.xlu1 %1644, %v315_v22  }
  0x91   : > { %391 = vperm.xlu0 %1673, %v1889_v11  }
  0x94   : > { %1645 = vset.pattern.permute.xlu1 %v1768_v6 }
  0x95   : > { %779 = vperm.xlu1 %1645, %v314_v21   ;;  %411 = vperm.xlu0 %1673, %v1894_v12  }
  0x99   : > { %1646 = vset.pattern.permute.xlu1 %v1766_v0  ;;  %v532_v32 = vpop.permute.xlu1 %531  ;;  %v337_v33 = vpop.permute.xlu0 %336  ;;  %416 = vperm.xlu0 %1673, %v1899_v13  }
  0x9a   : > { %591 = vperm.xlu1 %1646, %v1894_v12   ;;  %v662_v56 = vmul.f32 %v1979_v40, %v532_v32  ;;  %v498_v57 = vmul.f32 %v1981_v41, %v337_v33 }
  0x9c   : > { %v694_v2 = vadd.f32 %v662_v56, %v498_v57 }
  0x9d   : > { %v536_v36 = vpop.permute.xlu1 %535  ;;  %v342_v37 = vpop.permute.xlu0 %341  ;;  %436 = vperm.xlu0 %1673, %v1903_v14  }
  0x9e   : > { %1647 = vset.pattern.permute.xlu1 %v1768_v6  ;;  %v663_v44 = vmul.f32 %v1979_v40, %v536_v36  ;;  %v499_v45 = vmul.f32 %v1981_v41, %v342_v37 }
  0x9f   : > { %783 = vperm.xlu1 %1647, %v315_v22  }
  0xa0   : > { %v695_v50 = vadd.f32 %v663_v44, %v499_v45 }
  0xa1   : > { %v540_v42 = vpop.permute.xlu1 %539  ;;  %v347_v43 = vpop.permute.xlu0 %346  ;;  %441 = vperm.xlu0 %1673, %v1909_v16  }
  0xa2   : > { %v664_v59 = vmul.f32 %v1979_v40, %v540_v42  ;;  %v500_v60 = vmul.f32 %v1981_v41, %v347_v43 }
  0xa3   : > { %1648 = vset.pattern.permute.xlu1 %v1766_v0 }
  0xa4   : > { %595 = vperm.xlu1 %1648, %v1899_v13   ;;  %v696_v5 = vadd.f32 %v664_v59, %v500_v60 }
  0xa5   : > { %v1990_v47 = vpop.permute.xlu0 %361  ;;  %461 = vperm.xlu0 %1673, %v1914_v17  }
  0xa6   : > { %v732_v48 = vpop.permute.xlu1 %731  ;;  %v503_v39 = vmul.f32 %v1981_v41, %v1990_v47 }
  0xa7   : > { %v859_v51 = vmul.f32 %v1987_v46, %v732_v48 }
  0xa8   : > { %1649 = vset.pattern.permute.xlu1 %v1767_v1 }
  0xa9   : > { %v891_v52 = vadd.f32 %v859_v51, %v695_v50  ;;  %421 = vperm.xlu1 %1649, %v318_v49   ;;  %v1996_v53 = vpop.permute.xlu0 %366  ;;  %466 = vperm.xlu0 %1673, %v1919_v18  }
  0xaa   : > { %v504_v47 = vmul.f32 %v1981_v41, %v1996_v53 }
  0xab   : > { %v2009_v58 = vpop.permute.xlu1 %351  ;;  %v930_v61 = vadd.f32 %v2002_v54, %v891_v52 }
  0xad   : > { %1650 = vset.pattern.permute.xlu1 %v1766_v0  ;;  %486 = vperm.xlu0 %1673, %v2005_v55   ;;  %v994_v9 = vmul.f32 0.01, %v930_v61  ;;  %vm962_vm0 = vcmp.ge.f32.partialorder %v930_v61, 0.0 }
  0xae   : > { %599 = vperm.xlu1 %1650, %v318_v49   ;;  %v728_v62 = vpop.permute.xlu0 %727 }
  0xaf   : > { %v858_v3 = vmul.f32 %v1987_v46, %v728_v62  ;;  %v2029_v20 = vsel %vm962_vm0, %v930_v61, %v994_v9 }
  0xb0   : > { %v736_v4 = vpop.permute.xlu1 %735  ;;  %v1060_v31 = vsel %vm1058_vm1, %v2029_v20, 0.0 }
  0xb1   : > { %v890_v7 = vadd.f32 %v858_v3, %v694_v2  ;;  %v860_v8 = vmul.f32 %v1987_v46, %v736_v4  ;;  %491 = vperm.xlu0 %1673, %v2017_v63   ;;  %v323_v3 = vld [vmem:[%s1869_s15 + $0xb0] sm:$0xff] }
  0xb2   : > { %1651 = vset.pattern.permute.xlu1 %v1767_v1  ;;  %v748_v10 = vpop.permute.xlu0 %747 }
  0xb3   : > { %v929_v11 = vadd.f32 %v2002_v54, %v890_v7  ;;  %v892_v12 = vadd.f32 %v860_v8, %v696_v5  ;;  %426 = vperm.xlu1 %1651, %v1935_v23   ;;  %v863_v44 = vmul.f32 %v1987_v46, %v748_v10 }
  0xb5   : > { %v931_v13 = vadd.f32 %v2002_v54, %v892_v12  ;;  %v2026_v15 = vpop.permute.xlu1 %356  ;;  %1678 = vset.pattern.permute.xlu0 %v1768_v6  ;;  %vm961_vm2 = vcmp.ge.f32.partialorder %v929_v11, 0.0  ;;  %v993_v19 = vmul.f32 0.01, %v929_v11 }
  0xb6   : > { %v752_v21 = vpop.permute.xlu0 %751  ;;  %847 = vperm.xlu0 %1678, %v2005_v55  }
  0xb7   : > { %vm963_vm3 = vcmp.ge.f32.partialorder %v931_v13, 0.0  ;;  %v995_v22 = vmul.f32 0.01, %v931_v13  ;;  %1652 = vset.pattern.permute.xlu1 %v1768_v6  ;;  %v2033_v25 = vsel %vm961_vm2, %v929_v11, %v993_v19  ;;  %v864_v57 = vmul.f32 %v1987_v46, %v752_v21 }
  0xb8   : > { %795 = vperm.xlu1 %1652, %v318_v49   ;;  %v1059_v30 = vsel %vm1058_vm1, %v2033_v25, 0.0  ;;  %v1133_v32 = vpack.c.bf16 %v2029_v20, %v2033_v25 }
  0xb9   : > { %v2041_v33 = vsel %vm963_vm3, %v931_v13, %v995_v22  ;;  %v1061_v34 = vadd.f32 %v1060_v31, %v1059_v30  ;;  %v502_v30 = vmul.f32 %v1981_v41, %v2026_v15 }
  0xba   : > { %v740_v35 = vpop.permute.xlu1 %739  ;;  %v2043_v36 = vpop.permute.xlu0 %767  ;;  %v1062_v37 = vsel %vm1058_vm1, %v2041_v33, 0.0 }
  0xbb   : > { %v2047_v38 = vadd.f32 %v1062_v37, %v1061_v34  ;;  %v861_v12 = vmul.f32 %v1987_v46, %v740_v35 }
  0xbc   : > { %1653 = vset.pattern.permute.xlu1 %v1767_v1 }
  0xbd   : > { %431 = vperm.xlu1 %1653, %v1939_v24  }
  0xbe   : > { %v2053_v42 = vpop.permute.xlu0 %771 }
  0xbf   : > { %v552_v43 = vpop.permute.xlu1 %551 }
  0xc0   : > { %v667_v45 = vmul.f32 %v1979_v40, %v552_v43 }
  0xc1   : > { %1654 = vset.pattern.permute.xlu1 %v1768_v6 }
  0xc2   : > { %v699_v48 = vadd.f32 %v667_v45, %v503_v39  ;;  %799 = vperm.xlu1 %1654, %v1935_v23   ;;  %v2059_v49 = vpop.permute.xlu0 %787 }
  0xc4   : > { %v895_v50 = vadd.f32 %v863_v44, %v699_v48  ;;  %v744_v51 = vpop.permute.xlu1 %743 }
  0xc5   : > { %v862_v48 = vmul.f32 %v1987_v46, %v744_v51 }
  0xc6   : > { %1655 = vset.pattern.permute.xlu1 %v1766_v0  ;;  %v2062_v52 = vpop.permute.xlu0 %791  ;;  %v934_v37 = vadd.f32 %v2002_v54, %v895_v50 }
  0xc7   : > { %611 = vperm.xlu1 %1655, %v1903_v14  }
  0xc8   : > { %vm966_vm7 = vcmp.ge.f32.partialorder %v934_v37, 0.0 }
  0xc9   : > { %v556_v56 = vpop.permute.xlu1 %555 }
  0xca   : > { %v668_v59 = vmul.f32 %v1979_v40, %v556_v56  ;;  %v2069_v23 = vpop.permute.xlu0 %807 }
  0xcb   : > { %1656 = vset.pattern.permute.xlu1 %v1768_v6 }
  0xcc   : > { %v700_v60 = vadd.f32 %v668_v59, %v504_v47  ;;  %803 = vperm.xlu1 %1656, %v1939_v24  }
  0xce   : > { %v896_v61 = vadd.f32 %v864_v57, %v700_v60  ;;  %v372_v62 = vpop.permute.xlu1 %371  ;;  %v2073_v2 = vpop.permute.xlu0 %811  ;;  %v998_v60 = vmul.f32 0.01, %v934_v37 }
  0xcf   : > { %v505_v4 = vmul.f32 %v1981_v41, %v372_v62 }
  0xd0   : > { %1657 = vset.pattern.permute.xlu1 %v1766_v0  ;;  %v935_v13 = vadd.f32 %v2002_v54, %v896_v61 }
  0xd1   : > { %615 = vperm.xlu1 %1657, %v1909_v16   ;;  %v501_v16 = vmul.f32 %v1981_v41, %v2009_v58 }
  0xd2   : > { %v2077_v14 = vpop.permute.xlu0 %827  ;;  %v999_v35 = vmul.f32 0.01, %v935_v13  ;;  %vm967_vm4 = vcmp.ge.f32.partialorder %v935_v13, 0.0 }
  0xd3   : > { %v560_v53 = vpop.permute.xlu1 %559 }
  0xd4   : > { %v669_v5 = vmul.f32 %v1979_v40, %v560_v53  ;;  %v2104_v61 = vsel %vm967_vm4, %v935_v13, %v999_v35  ;;  %vm299_vm4 = vcmask 516096  }
  0xd5   : > { %1658 = vset.pattern.permute.xlu1 %v1767_v1 }
  0xd6   : > { %v701_v7 = vadd.f32 %v669_v5, %v505_v4  ;;  %446 = vperm.xlu1 %1658, %v323_v3   ;;  %v2083_v24 = vpop.permute.xlu0 %831 }
  0xd8   : > { %v377_v8 = vpop.permute.xlu1 %376 }
  0xd9   : > { %v506_v50 = vmul.f32 %v1981_v41, %v377_v8 }
  0xda   : > { %1659 = vset.pattern.permute.xlu1 %v1766_v0 }
  0xdb   : > { %619 = vperm.xlu1 %1659, %v323_v3   ;;  %v544_v9 = vpop.permute.xlu0 %543 }
  0xdc   : > { %v665_v10 = vmul.f32 %v1979_v40, %v544_v9 }
  0xdd   : > { %v756_v11 = vpop.permute.xlu1 %755 }
  0xde   : > { %v697_v19 = vadd.f32 %v665_v10, %v501_v16  ;;  %v865_v21 = vmul.f32 %v1987_v46, %v756_v11 }
  0xdf   : > { %1660 = vset.pattern.permute.xlu1 %v1767_v1  ;;  %v548_v22 = vpop.permute.xlu0 %547 }
  0xe0   : > { %v893_v31 = vadd.f32 %v861_v12, %v697_v19  ;;  %v897_v34 = vadd.f32 %v865_v21, %v701_v7  ;;  %v666_v58 = vmul.f32 %v1979_v40, %v548_v22  ;;  %451 = vperm.xlu1 %1660, %v1946_v26   ;;  %v2124_v22 = vsel %vm966_vm7, %v934_v37, %v998_v60 }
  0xe2   : > { %v932_v39 = vadd.f32 %v2002_v54, %v893_v31  ;;  %v936_v43 = vadd.f32 %v2002_v54, %v897_v34  ;;  %v698_v44 = vadd.f32 %v666_v58, %v502_v30  ;;  %v382_v45 = vpop.permute.xlu1 %381 }
  0xe3   : > { %v564_v47 = vpop.permute.xlu0 %563  ;;  %v507_v4 = vmul.f32 %v1981_v41, %v382_v45 }
  0xe4   : > { %vm964_vm5 = vcmp.ge.f32.partialorder %v932_v39, 0.0  ;;  %v996_v15 = vmul.f32 0.01, %v932_v39  ;;  %vm968_vm6 = vcmp.ge.f32.partialorder %v936_v43, 0.0  ;;  %v1000_v56 = vmul.f32 0.01, %v936_v43  ;;  %1661 = vset.pattern.permute.xlu1 %v1768_v6 }
  0xe5   : > { %v894_v57 = vadd.f32 %v862_v48, %v698_v44  ;;  %v670_v59 = vmul.f32 %v1979_v40, %v564_v47  ;;  %815 = vperm.xlu1 %1661, %v323_v3   ;;  %v1070_v48 = vsel %vm1058_vm1, %v2104_v61, 0.0 }
  0xe6   : > { %v2106_v62 = vsel %vm964_vm5, %v932_v39, %v996_v15  ;;  %v2108_v51 = vsel %vm968_vm6, %v936_v43, %v1000_v56  ;;  %v1068_v43 = vsel %vm1058_vm1, %v2124_v22, 0.0  ;;  %vm1771_vm6 = vmmov 0  }
  0xe7   : > { %v933_v53 = vadd.f32 %v2002_v54, %v894_v57  ;;  %v702_v5 = vadd.f32 %v670_v59, %v506_v50  ;;  %v760_v7 = vpop.permute.xlu1 %759  ;;  %v568_v9 = vpop.permute.xlu0 %567  ;;  %v1064_v8 = vsel %vm1058_vm1, %v2106_v62, 0.0  ;;  %v1134_v11 = vpack.c.bf16 %v2106_v62, %v2041_v33 }
  0xe8   : > { %v866_v16 = vmul.f32 %v1987_v46, %v760_v7  ;;  %v671_v3 = vmul.f32 %v1979_v40, %v568_v9  ;;  %v1065_v10 = vadd.f32 %v1064_v8, %v2047_v38  ;;  %v1136_v13 = vpack.c.bf16 %v2108_v51, %v2104_v61 }
  0xe9   : > { %vm965_vm8 = vcmp.ge.f32.partialorder %v933_v53, 0.0  ;;  %v997_v12 = vmul.f32 0.01, %v933_v53  ;;  %1662 = vset.pattern.permute.xlu1 %v1767_v1  ;;  %v1072_v50 = vsel %vm1058_vm1, %v2108_v51, 0.0 }
  0xea   : > { %v898_v19 = vadd.f32 %v866_v16, %v702_v5  ;;  %v703_v21 = vadd.f32 %v671_v3, %v507_v4  ;;  %456 = vperm.xlu1 %1662, %v1951_v27  }
  0xeb   : > { %v2126_v30 = vsel %vm965_vm8, %v933_v53, %v997_v12  ;;  %v584_v38 = vpop.permute.xlu0 %583 }
  0xec   : > { %v1066_v31 = vsel %vm1058_vm1, %v2126_v30, 0.0  ;;  %v937_v34 = vadd.f32 %v2002_v54, %v898_v19  ;;  %v572_v58 = vpop.permute.xlu1 %571  ;;  %v1135_v35 = vpack.c.bf16 %v2124_v22, %v2126_v30 }
  0xed   : > { %v1067_v39 = vadd.f32 %v1066_v31, %v1065_v10  ;;  %v328_v31 = vld [vmem:[%s1869_s15 + $0xd8] sm:$0xff] }
  0xee   : > { %vm969_vm9 = vcmp.ge.f32.partialorder %v937_v34, 0.0  ;;  %v1001_v44 = vmul.f32 0.01, %v937_v34  ;;  %1663 = vset.pattern.permute.xlu1 %v1768_v6  ;;  %v1164_v33 = vsel %vm1058_vm1, %v1135_v35, 0 }
  0xef   : > { %819 = vperm.xlu1 %1663, %v1946_v26   ;;  %v588_v37 = vpop.permute.xlu0 %587  ;;  %v1069_v45 = vadd.f32 %v1068_v43, %v1067_v39 }
  0xf0   : > { %v2139_v47 = vsel %vm969_vm9, %v937_v34, %v1001_v44 }
  0xf1   : > { %v764_v15 = vpop.permute.xlu1 %763  ;;  %v1071_v56 = vadd.f32 %v1070_v48, %v1069_v45  ;;  %v1074_v26 = vsel %vm1058_vm1, %v2139_v47, 0.0  ;;  %v675_v45 = vmul.f32 %v1979_v40, %v584_v38  ;;  %v672_v38 = vmul.f32 %v1979_v40, %v572_v58 }
  0xf2   : > { %v867_v57 = vmul.f32 %v1987_v46, %v764_v15 }
  0xf3   : > { %1664 = vset.pattern.permute.xlu1 %v1766_v0  ;;  %v2145_v59 = vpop.permute.xlu0 %603  ;;  %v1073_v60 = vadd.f32 %v1072_v50, %v1071_v56 }
  0xf4   : > { %v899_v53 = vadd.f32 %v867_v57, %v703_v21  ;;  %631 = vperm.xlu1 %1664, %v1914_v17  }
  0xf5   : > { %v1075_v4 = vadd.f32 %v1074_v26, %v1073_v60  ;;  %v868_v26 = vmul.f32 %v1987_v46, %v2043_v36 }
  0xf6   : > { %v938_v5 = vadd.f32 %v2002_v54, %v899_v53  ;;  %v576_v7 = vpop.permute.xlu1 %575 }
  0xf7   : > { %v2151_v9 = vpop.permute.xlu0 %607 }
  0xf8   : > { %vm970_vm10 = vcmp.ge.f32.partialorder %v938_v5, 0.0  ;;  %v1002_v8 = vmul.f32 0.01, %v938_v5  ;;  %1665 = vset.pattern.permute.xlu1 %v1768_v6 }
  0xf9   : > { %823 = vperm.xlu1 %1665, %v1951_v27  }
  0xfa   : > { %v2155_v16 = vsel %vm970_vm10, %v938_v5, %v1002_v8  ;;  %v676_v5 = vmul.f32 %v1979_v40, %v588_v37 }
  0xfb   : > { %v1076_v3 = vsel %vm1058_vm1, %v2155_v16, 0.0  ;;  %v397_v10 = vpop.permute.xlu1 %396  ;;  %v2159_v17 = vpop.permute.xlu0 %623  ;;  %v1137_v12 = vpack.c.bf16 %v2155_v16, %v2139_v47 }
  0xfc   : > { %v2163_v19 = vadd.f32 %v1076_v3, %v1075_v4  ;;  %v510_v34 = vmul.f32 %v1981_v41, %v397_v10  ;;  %v685_v22 = vmul.f32 %v1979_v40, %v2159_v17 }
  0xfd   : > { %1666 = vset.pattern.permute.xlu1 %v1766_v0 }
  0xfe   : > { %635 = vperm.xlu1 %1666, %v1919_v18  }
  0xff   : > { %v2167_v21 = vpop.permute.xlu0 %627 }
 0x100   : > { %v580_v27 = vpop.permute.xlu1 %579 }
 0x101   : > { %v674_v39 = vmul.f32 %v1979_v40, %v580_v27 }
 0x102   : > { %1667 = vset.pattern.permute.xlu1 %v1767_v1 }
 0x103   : > { %v706_v43 = vadd.f32 %v674_v39, %v510_v34  ;;  %471 = vperm.xlu1 %1667, %v328_v31   ;;  %v2173_v44 = vpop.permute.xlu0 %643  ;;  %v869_v34 = vmul.f32 %v1987_v46, %v2053_v42  ;;  %v673_v39 = vmul.f32 %v1979_v40, %v576_v7 }
 0x105   : > { %v402_v48 = vpop.permute.xlu1 %401 }
 0x106   : > { %v511_v15 = vmul.f32 %v1981_v41, %v402_v48 }
 0x107   : > { %1668 = vset.pattern.permute.xlu1 %v1766_v0  ;;  %v2178_v18 = vpop.permute.xlu0 %647 }
 0x108   : > { %v707_v56 = vadd.f32 %v675_v45, %v511_v15  ;;  %639 = vperm.xlu1 %1668, %v328_v31  }
 0x10a   : > { %v776_v50 = vpop.permute.xlu1 %775 }
 0x10b   : > { %v870_v57 = vmul.f32 %v1987_v46, %v776_v50 }
 0x10c   : > { %1670 = vset.pattern.permute.xlu1 %v1767_v1  ;;  %v387_v60 = vpop.permute.xlu0 %386 }
 0x10d   : > { %v902_v53 = vadd.f32 %v870_v57, %v706_v43  ;;  %v508_v4 = vmul.f32 %v1981_v41, %v387_v60  ;;  %476 = vperm.xlu1 %1670, %v1956_v28  }
 0x10f   : > { %v704_v8 = vadd.f32 %v672_v38, %v508_v4  ;;  %v407_v3 = vpop.permute.xlu1 %406  ;;  %v941_v45 = vadd.f32 %v2002_v54, %v902_v53 }
 0x110   : > { %v512_v10 = vmul.f32 %v1981_v41, %v407_v3  ;;  %v392_v27 = vpop.permute.xlu0 %391 }
 0x111   : > { %v900_v36 = vadd.f32 %v868_v26, %v704_v8  ;;  %v509_v58 = vmul.f32 %v1981_v41, %v392_v27  ;;  %1671 = vset.pattern.permute.xlu1 %v1768_v6  ;;  %v1005_v7 = vmul.f32 0.01, %v941_v45  ;;  %vm973_vm12 = vcmp.ge.f32.partialorder %v941_v45, 0.0 }
 0x112   : > { %v708_v43 = vadd.f32 %v676_v5, %v512_v10  ;;  %835 = vperm.xlu1 %1671, %v328_v31  }
 0x113   : > { %v939_v37 = vadd.f32 %v2002_v54, %v900_v36  ;;  %v705_v48 = vadd.f32 %v673_v39, %v509_v58  ;;  %v2210_v27 = vsel %vm973_vm12, %v941_v45, %v1005_v7 }
 0x114   : > { %v780_v15 = vpop.permute.xlu1 %779  ;;  %v412_v60 = vpop.permute.xlu0 %411  ;;  %v1082_v45 = vsel %vm1058_vm1, %v2210_v27, 0.0 }
 0x115   : > { %vm971_vm11 = vcmp.ge.f32.partialorder %v939_v37, 0.0  ;;  %v1003_v50 = vmul.f32 0.01, %v939_v37  ;;  %v901_v57 = vadd.f32 %v869_v34, %v705_v48  ;;  %v871_v42 = vmul.f32 %v1987_v46, %v780_v15 }
 0x116   : > { %1672 = vset.pattern.permute.xlu1 %v1767_v1  ;;  %v513_v4 = vmul.f32 %v1981_v41, %v412_v60  ;;  %v873_v1 = vmul.f32 %v1987_v46, %v2059_v49 }
 0x117   : > { %v2198_v26 = vsel %vm971_vm11, %v939_v37, %v1003_v50  ;;  %v940_v38 = vadd.f32 %v2002_v54, %v901_v57  ;;  %v903_v31 = vadd.f32 %v871_v42, %v707_v56  ;;  %481 = vperm.xlu1 %1672, %v1961_v29  }
 0x118   : > { %v1078_v53 = vsel %vm1058_vm1, %v2198_v26, 0.0  ;;  %v417_v42 = vpop.permute.xlu0 %416 }
 0x119   : > { %vm972_vm13 = vcmp.ge.f32.partialorder %v940_v38, 0.0  ;;  %v1004_v5 = vmul.f32 0.01, %v940_v38  ;;  %v942_v8 = vadd.f32 %v2002_v54, %v903_v31  ;;  %v592_v3 = vpop.permute.xlu1 %591  ;;  %v1079_v56 = vadd.f32 %v1078_v53, %v2163_v19 }
 0x11a   : > { %v677_v10 = vmul.f32 %v1979_v40, %v592_v3  ;;  %v514_v53 = vmul.f32 %v1981_v41, %v417_v42 }
 0x11b   : > { %v2212_v34 = vsel %vm972_vm13, %v940_v38, %v1004_v5  ;;  %vm974_vm14 = vcmp.ge.f32.partialorder %v942_v8, 0.0  ;;  %v1006_v39 = vmul.f32 0.01, %v942_v8  ;;  %1674 = vset.pattern.permute.xlu1 %v1768_v6 }
 0x11c   : > { %v1080_v36 = vsel %vm1058_vm1, %v2212_v34, 0.0  ;;  %v709_v58 = vadd.f32 %v677_v10, %v513_v4  ;;  %839 = vperm.xlu1 %1674, %v1956_v28   ;;  %v1138_v49 = vpack.c.bf16 %v2212_v34, %v2198_v26  ;;  %v874_v10 = vmul.f32 %v1987_v46, %v2062_v52 }
 0x11d   : > { %v2220_v37 = vsel %vm974_vm14, %v942_v8, %v1006_v39  ;;  %v1081_v19 = vadd.f32 %v1080_v36, %v1079_v56  ;;  %v691_v26 = vmul.f32 %v1979_v40, %v2178_v18 }
 0x11e   : > { %v905_v48 = vadd.f32 %v873_v1, %v709_v58  ;;  %v784_v15 = vpop.permute.xlu1 %783  ;;  %v1139_v50 = vpack.c.bf16 %v2220_v37, %v2210_v27  ;;  %v1084_v28 = vsel %vm1058_vm1, %v2220_v37, 0.0 }
 0x11f   : > { %v872_v57 = vmul.f32 %v1987_v46, %v784_v15  ;;  %v1083_v60 = vadd.f32 %v1082_v45, %v1081_v19 }
 0x120   : > { %v944_v7 = vadd.f32 %v2002_v54, %v905_v48  ;;  %1675 = vset.pattern.permute.xlu1 %v1766_v0 }
 0x121   : > { %v904_v38 = vadd.f32 %v872_v57, %v708_v43  ;;  %651 = vperm.xlu1 %1675, %v2005_v55   ;;  %v1085_v31 = vadd.f32 %v1084_v28, %v1083_v60 }
 0x122   : > { %v1008_v4 = vmul.f32 0.01, %v944_v7  ;;  %vm976_vm15 = vcmp.ge.f32.partialorder %v944_v7, 0.0 }
 0x123   : > { %v943_v5 = vadd.f32 %v2002_v54, %v904_v38  ;;  %v596_v8 = vpop.permute.xlu1 %595 }
 0x124   : > { %v678_v3 = vmul.f32 %v1979_v40, %v596_v8  ;;  %v2239_v55 = vsel %vm976_vm15, %v944_v7, %v1008_v4 }
 0x125   : > { %vm975_vm0 = vcmp.ge.f32.partialorder %v943_v5, 0.0  ;;  %v1007_v1 = vmul.f32 0.01, %v943_v5  ;;  %1676 = vset.pattern.permute.xlu1 %v1768_v6  ;;  %v1088_v48 = vsel %vm1058_vm1, %v2239_v55, 0.0 }
 0x126   : > { %v710_v43 = vadd.f32 %v678_v3, %v514_v53  ;;  %843 = vperm.xlu1 %1676, %v1961_v29  }
 0x127   : > { %v2241_v56 = vsel %vm975_vm0, %v943_v5, %v1007_v1 }
 0x128   : > { %v1086_v39 = vsel %vm1058_vm1, %v2241_v56, 0.0  ;;  %v906_v36 = vadd.f32 %v874_v10, %v710_v43  ;;  %v422_v58 = vpop.permute.xlu1 %421  ;;  %v1140_v19 = vpack.c.bf16 %v2239_v55, %v2241_v56  ;;  %v1256_v43 = vld [vmem:[%s2476_s4] sm:$0xff] }
 0x129   : > { %v1087_v45 = vadd.f32 %v1086_v39, %v1085_v31  ;;  %v515_v31 = vmul.f32 %v1981_v41, %v422_v58  ;;  %v1257_v39 = vld [vmem:[%s2476_s4 + $0x8] sm:$0xff]  ;;  %v1680_v55 = vld [vmem:[%s2475_s3] sm:$0xff]  }
 0x12a   : > { %v945_v52 = vadd.f32 %v2002_v54, %v906_v36  ;;  %1677 = vset.pattern.permute.xlu1 %v1766_v0  ;;  %v1258_v36 = vld [vmem:[%s2476_s4 + $0x10] sm:$0xff]  ;;  %v1179_v27 = vsel %vm1058_vm1, %v1140_v19, 0  ;;  %1509 = vmatprep.mubr.msk.bf16.mxu0 %vm1058_vm1, %v1680_v55 }
 0x12b   : > { %655 = vperm.xlu1 %1677, %v2017_v63   ;;  %v1089_v29 = vadd.f32 %v1088_v48, %v1087_v45  ;;  %v1769_v48 = vmov 0.0|0.0  }
 0x12c   : > { %vm977_vm2 = vcmp.ge.f32.partialorder %v945_v52, 0.0  ;;  %v1009_v15 = vmul.f32 0.01, %v945_v52  ;;  %1539 = vmatprep.subr.bf16.mxu1 %v1769_v48 }
 0x12d   : > { %v600_v57 = vpop.permute.xlu1 %599 }
 0x12e   : > { %v1041_v42 = vsel %vm977_vm2, %v945_v52, %v1009_v15  ;;  %v679_v38 = vmul.f32 %v1979_v40, %v600_v57  ;;  %v1540_v52 = vpack.c.bf16 %v1257_v39, %v1256_v43  ;;  %v1770_v15 = vmov 0.0  }
 0x12f   : > { %1679 = vset.pattern.permute.xlu1 %v1768_v6  ;;  %v1090_v60 = vsel %vm1058_vm1, %v1041_v42, 0.0  ;;  %v680_v6 = vmul.f32 %v1979_v40, %v2145_v59  ;;  %300 = vst.msk [vmem:[#allocation2] sm:$0x1] %vm299_vm4, %v1770_v15  ;;  %v878_v43 = vmul.f32 %v1987_v46, %v2069_v23  ;;  %1536 = vmatprep.mubr.msk.f32.mxu1 %vm1771_vm6, %v1770_v15  ;;  %vm1337_vm6 = vcmask 122880  }
 0x130   : > { %851 = vperm.xlu1 %1679, %v2017_v63   ;;  %v1091_v28 = vadd.f32 %v1090_v60, %v1089_v29  ;;  %v711_v53 = vadd.f32 %v679_v38, %v515_v31  ;;  %v1259_v29 = vld [vmem:[%s2476_s4 + $0x18] sm:$0xff]  ;;  %v437_v38 = vpop.permute.xlu0 %436  ;;  %1541 = vmatpush3.bf16.msra.mxu1 %v1540_v52 }
 0x131   : > { %v1543_v31 = vpack.c.bf16 %v1259_v29, %v1258_v36  ;;  %1542 = vmatprep.subr.bf16.mxu1 %v1769_v48 }
 0x132   : > { %v427_v7 = vpop.permute.xlu1 %426 }
 0x133   : > { %v516_v1 = vmul.f32 %v1981_v41, %v427_v7 }
 0x134   : > { %1544 = vmatpush3.bf16.msra.mxu1 %v1543_v31 }
 0x135   : > { %v712_v57 = vadd.f32 %v680_v6, %v516_v1  ;;  %1545 = vmatprep.subr.bf16.mxu1 %v1769_v48 }
 0x137   : > { %v796_v0 = vpop.permute.xlu1 %795 }
 0x138   : > { %v875_v4 = vmul.f32 %v1987_v46, %v796_v0 }
 0x13a   : > { %v907_v5 = vadd.f32 %v875_v4, %v711_v53  ;;  %v1260_v53 = vld [vmem:[%s2476_s4 + $0x20] sm:$0xff]  ;;  %v518_v4 = vmul.f32 %v1981_v41, %v437_v38 }
 0x13c   : > { %v946_v8 = vadd.f32 %v2002_v54, %v907_v5  ;;  %v432_v3 = vpop.permute.xlu1 %431 }
 0x13d   : > { %v517_v6 = vmul.f32 %v1981_v41, %v432_v3 }
 0x13e   : > { %vm978_vm3 = vcmp.ge.f32.partialorder %v946_v8, 0.0  ;;  %v1010_v63 = vmul.f32 0.01, %v946_v8 }
 0x140   : > { %v1042_v10 = vsel %vm978_vm3, %v946_v8, %v1010_v63  ;;  %v681_v8 = vmul.f32 %v1979_v40, %v2151_v9  ;;  %v1262_v63 = vld [vmem:[%s2476_s4 + $0x30] sm:$0xff] }
 0x141   : > { %v800_v58 = vpop.permute.xlu1 %799  ;;  %v1092_v59 = vsel %vm1058_vm1, %v1042_v10, 0.0  ;;  %v1141_v45 = vpack.c.bf16 %v1042_v10, %v1041_v42  ;;  %v1158_v42 = vsel %vm1058_vm1, %v1133_v32, 0  ;;  %v1263_v10 = vld [vmem:[%s2476_s4 + $0x38] sm:$0xff] }
 0x142   : > { %v876_v60 = vmul.f32 %v1987_v46, %v800_v58  ;;  %v1093_v7 = vadd.f32 %v1092_v59, %v1091_v28  ;;  %v1261_v28 = vld [vmem:[%s2476_s4 + $0x28] sm:$0xff]  ;;  %v1549_v59 = vpack.c.bf16 %v1263_v10, %v1262_v63 }
 0x143   : > { %1551 = vmatprep.subr.msk.bf16.mxu0 %vm1058_vm1, %v1141_v45  ;;  %v1546_v32 = vpack.c.bf16 %v1261_v28, %v1260_v53  ;;  %v713_v45 = vadd.f32 %v681_v8, %v517_v6 }
 0x144   : > { %v908_v0 = vadd.f32 %v876_v60, %v712_v57  ;;  %1494 = vmatpush3.bf16.xpose.msra.mxu0 %v1158_v42  ;;  %v442_v57 = vpop.permute.xlu0 %441 }
 0x145   : > { %1547 = vmatpush3.bf16.msra.mxu1 %v1546_v32  ;;  %v519_v23 = vmul.f32 %v1981_v41, %v442_v57 }
 0x146   : > { %v947_v5 = vadd.f32 %v2002_v54, %v908_v0  ;;  %v612_v20 = vpop.permute.xlu1 %611  ;;  %1548 = vmatprep.subr.bf16.mxu1 %v1769_v48 }
 0x147   : > { %v682_v25 = vmul.f32 %v1979_v40, %v612_v20 }
 0x148   : > { %vm979_vm5 = vcmp.ge.f32.partialorder %v947_v5, 0.0  ;;  %v1011_v1 = vmul.f32 0.01, %v947_v5 }
 0x149   : > { %v714_v39 = vadd.f32 %v682_v25, %v518_v4  ;;  %1550 = vmatpush3.bf16.msra.mxu1 %v1549_v59 }
 0x14a   : > { %v1043_v36 = vsel %vm979_vm5, %v947_v5, %v1011_v1  ;;  %v1161_v1 = vsel %vm1058_vm1, %v1134_v11, 0 }
 0x14b   : > { %v1094_v9 = vsel %vm1058_vm1, %v1043_v36, 0.0  ;;  %v910_v58 = vadd.f32 %v878_v43, %v714_v39  ;;  %v804_v3 = vpop.permute.xlu1 %803 }
 0x14c   : > { %v1095_v52 = vadd.f32 %v1094_v9, %v1093_v7  ;;  %v877_v29 = vmul.f32 %v1987_v46, %v804_v3  ;;  %v879_v7 = vmul.f32 %v1987_v46, %v2073_v2 }
 0x14d   : > { %v949_v60 = vadd.f32 %v2002_v54, %v910_v58 }
 0x14e   : > { %v909_v38 = vadd.f32 %v877_v29, %v713_v45 }
 0x14f   : > { %v1013_v42 = vmul.f32 0.01, %v949_v60  ;;  %vm981_vm7 = vcmp.ge.f32.partialorder %v949_v60, 0.0 }
 0x150   : > { %v948_v31 = vadd.f32 %v2002_v54, %v909_v38  ;;  %v616_v0 = vpop.permute.xlu1 %615 }
 0x151   : > { %v683_v53 = vmul.f32 %v1979_v40, %v616_v0  ;;  %v1045_v4 = vsel %vm981_vm7, %v949_v60, %v1013_v42 }
 0x152   : > { %vm980_vm8 = vcmp.ge.f32.partialorder %v948_v31, 0.0  ;;  %v1012_v15 = vmul.f32 0.01, %v948_v31  ;;  %v1098_v2 = vsel %vm1058_vm1, %v1045_v4, 0.0 }
 0x153   : > { %v715_v28 = vadd.f32 %v683_v53, %v519_v23 }
 0x154   : > { %v1044_v48 = vsel %vm980_vm8, %v948_v31, %v1012_v15  ;;  %v462_v31 = vpop.permute.xlu0 %461 }
 0x155   : > { %v911_v5 = vadd.f32 %v879_v7, %v715_v28  ;;  %v447_v20 = vpop.permute.xlu1 %446  ;;  %v1096_v25 = vsel %vm1058_vm1, %v1044_v48, 0.0  ;;  %v1142_v32 = vpack.c.bf16 %v1044_v48, %v1043_v36  ;;  %v523_v15 = vmul.f32 %v1981_v41, %v462_v31 }
 0x156   : > { %v1097_v8 = vadd.f32 %v1096_v25, %v1095_v52  ;;  %v520_v11 = vmul.f32 %v1981_v41, %v447_v20  ;;  %v883_v20 = vmul.f32 %v1987_v46, %v2077_v14  ;;  %v1167_v14 = vsel %vm1058_vm1, %v1136_v13, 0 }
 0x157   : > { %v950_v6 = vadd.f32 %v2002_v54, %v911_v5  ;;  %1552 = vmatprep.subr.msk.bf16.mxu0 %vm1058_vm1, %v1142_v32  ;;  %v686_v32 = vmul.f32 %v1979_v40, %v2167_v21 }
 0x158   : > { %1496 = vmatpush3.bf16.xpose.msra.mxu0 %v1161_v1  ;;  %v1099_v63 = vadd.f32 %v1098_v2, %v1097_v8 }
 0x159   : > { %v1014_v10 = vmul.f32 0.01, %v950_v6  ;;  %vm982_vm9 = vcmp.ge.f32.partialorder %v950_v6, 0.0 }
 0x15a   : > { %v620_v43 = vpop.permute.xlu1 %619 }
 0x15b   : > { %v1046_v39 = vsel %vm982_vm9, %v950_v6, %v1014_v10  ;;  %v684_v62 = vmul.f32 %v1979_v40, %v620_v43 }
 0x15c   : > { %v1100_v36 = vsel %vm1058_vm1, %v1046_v39, 0.0  ;;  %v1143_v9 = vpack.c.bf16 %v1046_v39, %v1045_v4 }
 0x15d   : > { %v1101_v58 = vadd.f32 %v1100_v36, %v1099_v63  ;;  %v716_v45 = vadd.f32 %v684_v62, %v520_v11 }
 0x15e   : > { %1553 = vmatprep.subr.msk.bf16.mxu0 %vm1058_vm1, %v1143_v9 }
 0x15f   : > { %v452_v3 = vpop.permute.xlu1 %451 }
 0x160   : > { %1498 = vmatpush3.bf16.xpose.msra.mxu0 %v1164_v33  ;;  %v521_v38 = vmul.f32 %v1981_v41, %v452_v3 }
 0x162   : > { %v717_v23 = vadd.f32 %v685_v22, %v521_v38 }
 0x164   : > { %v816_v59 = vpop.permute.xlu1 %815 }
 0x165   : > { %v880_v52 = vmul.f32 %v1987_v46, %v816_v59 }
 0x167   : > { %v912_v29 = vadd.f32 %v880_v52, %v716_v45  ;;  %v884_v52 = vmul.f32 %v1987_v46, %v2083_v24  ;;  %v1170_v24 = vsel %vm1058_vm1, %v1137_v12, 0 }
 0x169   : > { %v951_v57 = vadd.f32 %v2002_v54, %v912_v29  ;;  %v457_v60 = vpop.permute.xlu1 %456 }
 0x16a   : > { %v522_v17 = vmul.f32 %v1981_v41, %v457_v60 }
 0x16b   : > { %v1015_v30 = vmul.f32 0.01, %v951_v57  ;;  %vm983_vm10 = vcmp.ge.f32.partialorder %v951_v57, 0.0 }
 0x16c   : > { %v718_v43 = vadd.f32 %v686_v32, %v522_v17 }
 0x16d   : > { %v1047_v53 = vsel %vm983_vm10, %v951_v57, %v1015_v30 }
 0x16e   : > { %v820_v35 = vpop.permute.xlu1 %819  ;;  %v1102_v4 = vsel %vm1058_vm1, %v1047_v53, 0.0 }
 0x16f   : > { %v881_v42 = vmul.f32 %v1987_v46, %v820_v35  ;;  %v1103_v6 = vadd.f32 %v1102_v4, %v1101_v58  ;;  %v467_v58 = vpop.permute.xlu0 %466 }
 0x170   : > { %v524_v3 = vmul.f32 %v1981_v41, %v467_v58 }
 0x171   : > { %v913_v0 = vadd.f32 %v881_v42, %v717_v23 }
 0x173   : > { %v952_v7 = vadd.f32 %v2002_v54, %v913_v0  ;;  %v632_v28 = vpop.permute.xlu1 %631 }
 0x174   : > { %v687_v48 = vmul.f32 %v1979_v40, %v632_v28 }
 0x175   : > { %vm984_vm11 = vcmp.ge.f32.partialorder %v952_v7, 0.0  ;;  %v1016_v5 = vmul.f32 0.01, %v952_v7 }
 0x176   : > { %v719_v25 = vadd.f32 %v687_v48, %v523_v15 }
 0x177   : > { %v1048_v8 = vsel %vm984_vm11, %v952_v7, %v1016_v5 }
 0x178   : > { %v915_v1 = vadd.f32 %v883_v20, %v719_v25  ;;  %v824_v2 = vpop.permute.xlu1 %823  ;;  %v1104_v63 = vsel %vm1058_vm1, %v1048_v8, 0.0  ;;  %v1144_v10 = vpack.c.bf16 %v1048_v8, %v1047_v53  ;;  %v487_v20 = vpop.permute.xlu0 %486  ;;  %v690_v8 = vmul.f32 %v1979_v40, %v2173_v44 }
 0x179   : > { %v882_v39 = vmul.f32 %v1987_v46, %v824_v2  ;;  %v1105_v36 = vadd.f32 %v1104_v63, %v1103_v6 }
 0x17a   : > { %v954_v9 = vadd.f32 %v2002_v54, %v915_v1  ;;  %1554 = vmatprep.subr.msk.bf16.mxu0 %vm1058_vm1, %v1144_v10 }
 0x17b   : > { %v914_v21 = vadd.f32 %v882_v39, %v718_v43  ;;  %1500 = vmatpush3.bf16.xpose.msra.mxu0 %v1167_v14  ;;  %v1173_v39 = vsel %vm1058_vm1, %v1138_v49, 0 }
 0x17c   : > { %v1018_v33 = vmul.f32 0.01, %v954_v9  ;;  %vm986_vm12 = vcmp.ge.f32.partialorder %v954_v9, 0.0  ;;  %v492_v43 = vpop.permute.xlu0 %491 }
 0x17d   : > { %v953_v62 = vadd.f32 %v2002_v54, %v914_v21  ;;  %v636_v11 = vpop.permute.xlu1 %635 }
 0x17e   : > { %v688_v59 = vmul.f32 %v1979_v40, %v636_v11  ;;  %v1050_v13 = vsel %vm986_vm12, %v954_v9, %v1018_v33 }
 0x17f   : > { %vm985_vm13 = vcmp.ge.f32.partialorder %v953_v62, 0.0  ;;  %v1017_v45 = vmul.f32 0.01, %v953_v62  ;;  %v1108_v35 = vsel %vm1058_vm1, %v1050_v13, 0.0 }
 0x180   : > { %v720_v61 = vadd.f32 %v688_v59, %v524_v3  ;;  %v848_v58 = vpop.permute.xlu0 %847  ;;  %v528_v3 = vmul.f32 %v1981_v41, %v487_v20 }
 0x181   : > { %v1049_v51 = vsel %vm985_vm13, %v953_v62, %v1017_v45  ;;  %v888_v11 = vmul.f32 %v1987_v46, %v848_v58 }
 0x182   : > { %v916_v29 = vadd.f32 %v884_v52, %v720_v61  ;;  %v472_v57 = vpop.permute.xlu1 %471  ;;  %v1106_v60 = vsel %vm1058_vm1, %v1049_v51, 0.0  ;;  %v1145_v38 = vpack.c.bf16 %v1050_v13, %v1049_v51 }
 0x183   : > { %v1107_v22 = vadd.f32 %v1106_v60, %v1105_v36  ;;  %v525_v48 = vmul.f32 %v1981_v41, %v472_v57  ;;  %v1685_v57 = vld [vmem:[%s2474_s2] ss:$0 sm:$0xff] }
 0x184   : > { %v955_v30 = vadd.f32 %v2002_v54, %v916_v29  ;;  %1555 = vmatprep.subr.msk.bf16.mxu0 %vm1058_vm1, %v1145_v38 }
 0x185   : > { %v1109_v23 = vadd.f32 %v1108_v35, %v1107_v22  ;;  %1502 = vmatpush3.bf16.xpose.msra.mxu0 %v1170_v24  ;;  %v529_v35 = vmul.f32 %v1981_v41, %v492_v43 }
 0x186   : > { %v1019_v42 = vmul.f32 0.01, %v955_v30  ;;  %vm987_vm14 = vcmp.ge.f32.partialorder %v955_v30, 0.0 }
 0x187   : > { %v640_v31 = vpop.permute.xlu1 %639 }
 0x188   : > { %v1051_v0 = vsel %vm987_vm14, %v955_v30, %v1019_v42  ;;  %v689_v28 = vmul.f32 %v1979_v40, %v640_v31 }
 0x189   : > { %v1110_v53 = vsel %vm1058_vm1, %v1051_v0, 0.0 }
 0x18a   : > { %v1111_v15 = vadd.f32 %v1110_v53, %v1109_v23  ;;  %v721_v17 = vadd.f32 %v689_v28, %v525_v48 }
 0x18c   : > { %v477_v7 = vpop.permute.xlu1 %476 }
 0x18d   : > { %v526_v25 = vmul.f32 %v1981_v41, %v477_v7 }
 0x18f   : > { %v722_v63 = vadd.f32 %v690_v8, %v526_v25  ;;  %v1057_v8 = vld [vmem:[#allocation2] sm:$0x1] }
 0x191   : > { %v836_v4 = vpop.permute.xlu1 %835 }
 0x192   : > { %v885_v47 = vmul.f32 %v1987_v46, %v836_v4 }
 0x194   : > { %v917_v16 = vadd.f32 %v885_v47, %v721_v17 }
 0x196   : > { %v956_v12 = vadd.f32 %v2002_v54, %v917_v16  ;;  %v482_v5 = vpop.permute.xlu1 %481 }
 0x197   : > { %v527_v33 = vmul.f32 %v1981_v41, %v482_v5 }
 0x198   : > { %vm988_vm15 = vcmp.ge.f32.partialorder %v956_v12, 0.0  ;;  %v1020_v32 = vmul.f32 0.01, %v956_v12 }
 0x199   : > { %v723_v52 = vadd.f32 %v691_v26, %v527_v33 }
 0x19a   : > { %v1052_v6 = vsel %vm988_vm15, %v956_v12, %v1020_v32 }
 0x19b   : > { %v840_v1 = vpop.permute.xlu1 %839  ;;  %v1146_v2 = vpack.c.bf16 %v1052_v6, %v1051_v0  ;;  %v1112_v44 = vsel %vm1058_vm1, %v1052_v6, 0.0 }
 0x19c   : > { %v886_v10 = vmul.f32 %v1987_v46, %v840_v1  ;;  %v1113_v34 = vadd.f32 %v1112_v44, %v1111_v15 }
 0x19d   : > { %1556 = vmatprep.subr.msk.bf16.mxu0 %vm1058_vm1, %v1146_v2 }
 0x19e   : > { %v918_v36 = vadd.f32 %v886_v10, %v722_v63  ;;  %1504 = vmatpush3.bf16.xpose.msra.mxu0 %v1173_v39 }
 0x1a0   : > { %v957_v9 = vadd.f32 %v2002_v54, %v918_v36  ;;  %v652_v14 = vpop.permute.xlu1 %651 }
 0x1a1   : > { %v692_v21 = vmul.f32 %v1979_v40, %v652_v14 }
 0x1a2   : > { %vm989_vm0 = vcmp.ge.f32.partialorder %v957_v9, 0.0  ;;  %v1021_v62 = vmul.f32 0.01, %v957_v9 }
 0x1a3   : > { %v724_v49 = vadd.f32 %v692_v21, %v528_v3 }
 0x1a4   : > { %v1053_v54 = vsel %vm989_vm0, %v957_v9, %v1021_v62 }
 0x1a5   : > { %v844_v59 = vpop.permute.xlu1 %843  ;;  %v1114_v45 = vsel %vm1058_vm1, %v1053_v54, 0.0  ;;  %v920_v13 = vadd.f32 %v888_v11, %v724_v49 }
 0x1a6   : > { %v887_v61 = vmul.f32 %v1987_v46, %v844_v59  ;;  %v1115_v51 = vadd.f32 %v1114_v45, %v1113_v34 }
 0x1a7   : > { %v959_v38 = vadd.f32 %v1685_v57, %v920_v13 }
 0x1a8   : > { %v919_v29 = vadd.f32 %v887_v61, %v723_v52 }
 0x1a9   : > { %v1023_v0 = vmul.f32 0.01, %v959_v38  ;;  %vm991_vm3 = vcmp.ge.f32.partialorder %v959_v38, 0.0 }
 0x1aa   : > { %v958_v60 = vadd.f32 %v1685_v57, %v919_v29  ;;  %v656_v18 = vpop.permute.xlu1 %655 }
 0x1ab   : > { %v693_v30 = vmul.f32 %v1979_v40, %v656_v18  ;;  %v1176_v40 = vsel %vm1058_vm1, %v1139_v50, 0  ;;  %v1055_v48 = vsel %vm991_vm3, %v959_v38, %v1023_v0 }
 0x1ac   : > { %vm990_vm2 = vcmp.ge.f32.partialorder %v958_v60, 0.0  ;;  %v1022_v22 = vmul.f32 0.01, %v958_v60  ;;  %v1118_v17 = vsel %vm1058_vm1, %v1055_v48, 0.0 }
 0x1ad   : > { %v725_v53 = vadd.f32 %v693_v30, %v529_v35 }
 0x1ae   : > { %v1054_v24 = vsel %vm990_vm2, %v958_v60, %v1022_v22 }
 0x1af   : > { %v852_v23 = vpop.permute.xlu1 %851  ;;  %v1116_v42 = vsel %vm1058_vm1, %v1054_v24, 0.0  ;;  %v1147_v31 = vpack.c.bf16 %v1054_v24, %v1053_v54 }
 0x1b0   : > { %v889_v15 = vmul.f32 %v1987_v46, %v852_v23  ;;  %v1117_v7 = vadd.f32 %v1116_v42, %v1115_v51 }
 0x1b1   : > { %1557 = vmatprep.subr.msk.bf16.mxu0 %vm1058_vm1, %v1147_v31 }
 0x1b2   : > { %v921_v28 = vadd.f32 %v889_v15, %v725_v53  ;;  %1506 = vmatpush3.bf16.xpose.msra.mxu0 %v1176_v40  ;;  %v1119_v16 = vadd.f32 %v1118_v17, %v1117_v7 }
 0x1b4   : > { %v960_v41 = vadd.f32 %v1685_v57, %v921_v28 }
 0x1b6   : > { %vm992_vm5 = vcmp.ge.f32.partialorder %v960_v41, 0.0  ;;  %v1024_v4 = vmul.f32 0.01, %v960_v41 }
 0x1b8   : > { %v1056_v47 = vsel %vm992_vm5, %v960_v41, %v1024_v4 }
 0x1b9   : > { %v1120_v46 = vsel %vm1058_vm1, %v1056_v47, 0.0  ;;  %v1148_v12 = vpack.c.bf16 %v1056_v47, %v1055_v48 }
 0x1ba   : > { %v1121_v5 = vadd.f32 %v1120_v46, %v1119_v16 }
 0x1bb   : > { %1558 = vmatprep.subr.msk.bf16.mxu0 %vm1058_vm1, %v1148_v12 }
 0x1bc   : > { %v1122_v37 = vrot.slane %v1121_v5, 4  ;;  %1508 = vmatpush3.bf16.xpose.msra.mxu0 %v1179_v27 }
 0x1be   : > { %v1123_v50 = vadd.f32 %v1122_v37, %v1121_v5 }
 0x1c0   : > { %v1124_v20 = vrot.slane %v1123_v50, 2 }
 0x1c2   : > { %v1125_v25 = vadd.f32 %v1124_v20, %v1123_v50 }
 0x1c3   : > { %1510 = vmatmul.mubr.msk.bf16.vlgmr.msra.gmra.mrb[0].mxu0 %vm1058_vm1, %v1680_v55 }
 0x1c4   : > { %v1126_v32 = vrot.slane %v1125_v25, 1 }
 0x1c6   : > { %v1127_v6 = vadd.f32 %v1126_v32, %v1125_v25 }
 0x1c8   : > { %v1128_v1 = vadd.f32 %v1127_v6, %v1057_v8 }
 0x1ca   : > { %1130 = vst.msk [vmem:[#allocation2] sm:$0x1] %vm299_vm4, %v1128_v1 }
 0x1d1   : > { %v1255_v2 = vld [vmem:[#allocation2] sm:$0x1] }
 0x1d2   : > { %1537 = vmatmul.mubr.msk.f32.vlgmr.msra.gmra.mrb[0].mxu1 %vm1058_vm1, %v1255_v2 }
 0x296   : > { %v1239_v14 = vpop.f32.mrb[0].mxu0 }
 0x297   : > { %v1241_v44 = vpop.f32.mrb[1].mxu0  ;;  %1248 = vst [vmem:[%s292_s16] sm:$0xff] %v1239_v14 }
 0x298   : > { %v1243_v21 = vpop.f32.mrb[2].mxu0  ;;  %1249 = vst [vmem:[%s292_s16 + $0x8] sm:$0xff] %v1241_v44 }
 0x299   : > { %v1245_v58 = vpop.f32.mrb[3].mxu0  ;;  %1250 = vst [vmem:[%s292_s16 + $0x10] sm:$0xff] %v1243_v21 }
 0x29a   : > { %1251 = vst [vmem:[%s292_s16 + $0x18] sm:$0xff] %v1245_v58 }
 0x2a5   : > { %v1333_v56 = vpop.f32.mrb[0].mxu1 }
 0x2a6   : > { %v1538_v19 = vpop.f32.mrb[1].mxu1  ;;  %v1338_v63 = vsel %vm1337_vm6, %v1333_v56, -inf }
 0x2a7   : > { %1339 = vmax.xlane.f32.xlu1 %v1338_v63 }
 0x334   : > { %v1340_v10 = vpop.xlane.xlu1 %1339 }
 0x335   : > { %v1341_v43 = vsub.f32 %v1333_v56, %v1340_v10 }
 0x337   : > { %v1342_v39 = vmul.f32 1.442695, %v1341_v43 }
 0x339   : > { %1681 = vpow2.f32 %v1342_v39 }
 0x343   : > { %v1682_v36 = vpop.eup %1681 }
 0x344   : > { %v1344_v9 = vsel %vm1337_vm6, %v1682_v36, 0.0 }
 0x345   : > { %1345 = vadd.xlane.f32.xlu0 %v1344_v9 }
 0x3d2   : > { %v1346_v3 = vpop.xlane.xlu0 %1345 }
 0x3d3   : > { %1683 = vrcp.f32 %v1346_v3 }
 0x3dd   : > { %v1684_v33 = vpop.eup %1683 }
 0x3de   : > { %v1348_v62 = vmul.f32 %v1684_v33, %v1682_v36 }
 0x3e0   : > { %1349 = vst.msk [vmem:[%s264_s19] sm:$0x1] %vm1337_vm6, %v1348_v62 }
 0x3e1   : > { %1699 = shalt.err (!%p1696_p6)
}
 0x3e2   : > { %s1700_s14 = scalar_lea.hbm %s2424_s30, 16  ;;  %s1704_s17 = scalar_lea.hbm %s2477_s5, 32 }
 0x3e3   : > { %p1701_p7 = scmp.ne.s32.totalorder %s2424_s30, %s1700_s14  ;;  %p1705_p11 = scmp.lt.u32.totalorder %s2424_s30, %s2477_s5 }
 0x3e4   : > { %p1706_p12 = scmp.lt.u32.totalorder %s1704_s17, %s1700_s14  ;;  %p1708_p0 = scmp.lt.u32.totalorder %s1700_s14, %s2424_s30 }
 0x3e5   : > { %p1702_p9 = pnand %p1701_p7, %p1848_p4 }
 0x3e6   : > { %p1707_p13 = por %p1706_p12, %p1705_p11 }
 0x3e7   : > { %p1703_p10 = pneg %p1702_p9 }
 0x3e8   : > { %p1709_p1 = por %p1708_p0, %p1707_p13 }
 0x3ea   : > { %p1710_p2 = pnand %p1709_p1, %p1703_p10 }
 0x3ec   : > { %1713 = shalt.err (!%p1710_p2)
}
 0x3ed   : > { %1559 = dma.vmem_to_hbm [thread:$0]  (%p1848_p4), %s2426_s20, 16, %s2424_s30, %s1351_s8  }
 0x3ee PF: > { %p1565_p3 = scmp.ge.s32.totalorder %s1764_s26, 2  ;;  %s1388_s27 = sand.u32 1, %s1744_s21  }
 0x3ef   : > { %s1389_s28 = scalar_lea.sflag [#allocation4], %s1388_s27 }
 0x3f0   : > { %p1562_p5 = pnand %p1565_p3, %p1855_p8 }
 0x3f2   : > { %1739 = dma.done.wait (!%p1562_p5), %s1389_s28, 16  }
 0x3f3   : > { %1741 = vsyncadd (!%p1562_p5), %s1389_s28, 4294967280  ;;  %s20_s26 = sadd.s32 1, %s1764_s26   ;;  %s2481_s21 = smov %s1748_s22 }
 0x3f4   : > { %p17_p6 = scmp.ge.s32.totalorder %s20_s26, 4   ;;  %s2482_s22 = smov %s1752_s23 }
 0x3f5   : > { %s2483_s23 = smov %s1861_s10  ;;  %s2484_s24 = smov %s1760_s25 }
 0x3f6   : > { %s2485_s25 = smov %s2487_s29  ;;  %19 = sbr.rel (!%p17_p6) target bundleno = 4 (0x4), region = 95 }
 0x3fd   :  { %1405 = vsyncpa [#allocation4], 1 }
 0x3fe   :  { %1407 = vsyncpa [#allocation4 + $0x1], 1 }

// kernel: model_forward.1
= control target key start
LH: loop header
LB: loop body
LE: loop exit
PB: predicated region body
PF: predicated region fallthrough
CT: control target
= control target key end

     0   :  { %12 = vsyncpa [#allocation4], 0  ;;  %s2472_s0 = inlined_call_operand.vmem [shape: f32[512,8], index: 0, kind: input, shape index: {}]   ;;  %s2473_s1 = inlined_call_operand.vmem [shape: f32[8,64], index: 1, kind: input, shape index: {}]   ;;  %s2474_s2 = inlined_call_operand.vmem [shape: f32[1,64], index: 2, kind: input, shape index: {}]   ;;  %s2475_s3 = inlined_call_operand.vmem [shape: bf16[16,64], index: 3, kind: input, shape index: {}]   ;;  %s2476_s4 = inlined_call_operand.vmem [shape: f32[64,16], index: 4, kind: input, shape index: {}]   ;;  %s2477_s5 = inlined_call_operand.hbm [shape: f32[2,1,16], index: 5, kind: output, shape index: {0}]   ;;  %s2478_s6 = inlined_call_operand.vmem [shape: f32[2,16,256], index: 6, kind: output, shape index: {1}]  }
   0x1   :  { %14 = vsyncpa [#allocation4 + $0x1], 0  ;;  %s1808_s21 = smov 0   ;;  %s1810_s22 = smov 0  }
   0x2   :  { %s1812_s23 = smov 0   ;;  %s1814_s24 = smov 0  }
   0x3   :  { %s1816_s25 = smov 0   ;;  %s1818_s26 = smov 0  }
   0x4 LB: > { %s1476_s27 = sadd.s32 4294967295, %s1764_s26   ;;  %s1477_s28 = sadd.s32 4294967294, %s1764_s26   ;;  %s1764_s26 = sphi %s1818_s26, %s20_s26   ;;  %s1760_s25 = sphi %s1816_s25, %s2485_s25   ;;  %s1756_s24 = sphi %s1814_s24, %s2484_s24   ;;  %s1752_s23 = sphi %s1812_s23, %s2483_s23   ;;  %s1748_s22 = sphi %s1810_s22, %s2482_s22   ;;  %s1744_s21 = sphi %s1808_s21, %s2481_s21  }
   0x5   : > { %s32_s29 = sadd.s32 1, %s1760_s25  ;;  %s151_s30 = sadd.s32 1, %s1752_s23 }
   0x6   : > { %p34_p0 = scmp.ge.s32.totalorder %s32_s29, 2  ;;  %p161_p1 = scmp.ne.s32.totalorder %s1752_s23, %s1748_s22 }
   0x7   : > { %p162_p2 = scmp.eq.s32.totalorder %s1476_s27, 1  ;;  %p167_p3 = scmp.ne.s32.totalorder %s1748_s22, %s1744_s21 }
   0x8   : > { %s2487_s29 = smov (%p34_p0, %s32_s29), 0  ;;  %p168_p5 = scmp.eq.s32.totalorder %s1477_s28, 1 }
   0x9   : > { %p1848_p4 = por %p162_p2, %p161_p1  ;;  %s148_s8 = ssub.s32 %s1760_s25, %s2487_s29 }
   0xa   : > { %p1480_p6 = scmp.ge.s32.totalorder %s1764_s26, 1  ;;  %p149_p7 = scmp.eq.s32.totalorder %s148_s8, 0 }
   0xb   : > { %p1855_p8 = por %p168_p5, %p167_p3  ;;  %p237_p9 = scmp.lt.s32.totalorder %s1764_s26, 3 }
   0xc   : > { %s1861_s10 = scalar_select %p149_p7, %s1752_s23, %s151_s30  }
   0xd   : > { %p238_p10 = pnand %p1480_p6, %p237_p9 }
   0xe   : > { %s1481_s11 = sshll.u32 (!%p238_p10), %s1756_s24, 5  ;;  %v1766_v0 = vmov (!%p238_p10), 1   ;;  %v1767_v1 = vmov (!%p238_p10), 0   ;;  %v1768_v6 = vmov (!%p238_p10), 2   ;;  %v494_v30 = vlaneseq (!%p238_p10)  ;;  %v333_v38 = vld [vmem:[%s2473_s1] sm:$0xff] (!%p238_p10)  ;;  %p285_p12 = scmp.lt.s32.totalorder (!%p238_p10), %s1756_s24, 1 }
   0xf   : > { %241 = sbr.rel (%p238_p10) target bundleno = 1006 (0x3ee), region = 40  ;;  %1621 = vset.pattern.permute.xlu1 (!%p238_p10), %v1766_v0  ;;  %1620 = vset.pattern.permute.xlu0 (!%p238_p10), %v1767_v1  ;;  %p278_p11 = scmp.lt.s32.totalorder (!%p238_p10), %s1481_s11, 63  ;;  %v2002_v54 = vld [vmem:[%s2474_s2] ss:$0 sm:$0xff] (!%p238_p10)  ;;  %vm1058_vm1 = vcmask (!%p238_p10), 523264  }
  0x10   : > { %v495_v31 = vshrl.u32 (!%p238_p10), %v494_v30, 7  ;;  %s263_s17 = sand.u32 (!%p238_p10), 1, %s1748_s22   ;;  %s1489_s18 = sshll.u32 (!%p238_p10), %s1756_s24, 4 }
  0x11   : > { %s264_s19 = scalar_lea.vmem (!%p238_p10), [#allocation3], %s263_s17  ;;  %s2424_s30 = scalar_lea.hbm (!%p238_p10), %s2477_s5, %s1489_s18 }
  0x12   : > { %v660_v34 = vsub.s32 (!%p238_p10), 1, %v495_v31  ;;  %v496_v35 = vsub.s32 (!%p238_p10), 0, %v495_v31  ;;  %v856_v39 = vsub.s32 (!%p238_p10), 2, %v495_v31  ;;  %s1372_s20 = sshll.u32 (!%p238_p10), %s264_s19, 4  ;;  %s1351_s8 = scalar_lea.sflag (!%p238_p10), [#allocation4], %s263_s17  ;;  %s2426_s20 = int_to_ptr.vmem [resolvable:$true] %s1372_s20 }
  0x14   : > { %v1979_v40 = vrot.slane (!%p238_p10), %v333_v38, %v660_v34  ;;  %v1981_v41 = vrot.slane (!%p238_p10), %v333_v38, %v496_v35  ;;  %v1987_v46 = vrot.slane (!%p238_p10), %v333_v38, %v856_v39 }
  0x16   : > { %s2489_s11 = smov (!%p278_p11, %s1481_s11), 63 }
  0x17   : > { %s1482_s12 = sshll.u32 %s2489_s11, 3  ;;  %s1686_s11 = scalar_lea.vmem %s2426_s20, 16 }
  0x18   : > { %s1869_s15 = scalar_lea.vmem %s2472_s0, %s1482_s12  ;;  %p1687_p13 = scmp.ne.s32.totalorder %s2426_s20, %s1686_s11 }
  0x19   : > { %v301_v2 = vld [vmem:[%s1869_s15] sm:$0xff]  ;;  %v302_v3 = vld [vmem:[%s1869_s15 + $0x8] sm:$0xff]  ;;  %v303_v4 = vld [vmem:[%s1869_s15 + $0x10] sm:$0xff]  ;;  %s286_s12 = scalar_select %p285_p12, %s1756_s24, 1 }
  0x1a   : > { %531 = vperm.xlu1 %1621, %v301_v2   ;;  %336 = vperm.xlu0 %1620, %v301_v2   ;;  %v306_v5 = vld [vmem:[%s1869_s15 + $0x28] sm:$0xff]  ;;  %v307_v7 = vld [vmem:[%s1869_s15 + $0x30] sm:$0xff]  ;;  %v304_v8 = vld [vmem:[%s1869_s15 + $0x18] sm:$0xff]  ;;  %p1688_p0 = pnand %p1687_p13, %p1848_p4  ;;  %s1772_s24 = smov [#allocation3]  }
  0x1b   : > { %v305_v9 = vld [vmem:[%s1869_s15 + $0x20] sm:$0xff]  ;;  %v1884_v10 = vld [vmem:[%s1869_s15 + $0x50] sm:$0xff]  ;;  %v1889_v11 = vld [vmem:[%s1869_s15 + $0x58] sm:$0xff]  ;;  %s1492_s13 = sshll.u32 %s286_s12, 5  ;;  %s1690_s12 = sshll.u32 %s1772_s24, 4  ;;  %s1691_s12 = int_to_ptr.vmem [resolvable:$false] %s1690_s12 }
  0x1c   : > { %v1894_v12 = vld [vmem:[%s1869_s15 + $0x78] sm:$0xff]  ;;  %v1899_v13 = vld [vmem:[%s1869_s15 + $0x80] sm:$0xff]  ;;  %v1909_v16 = vld [vmem:[%s1869_s15 + $0xa8] sm:$0xff]  ;;  %s292_s16 = scalar_lea.vmem %s2478_s6, %s1492_s13  ;;  %p1689_p1 = pneg %p1688_p0 }
  0x1d   : > { %v1903_v14 = vld [vmem:[%s1869_s15 + $0xa0] sm:$0xff]  ;;  %v308_v15 = vld [vmem:[%s1869_s15 + $0x38] sm:$0xff]  ;;  %v1914_v17 = vld [vmem:[%s1869_s15 + $0xc8] sm:$0xff]  ;;  %s1692_s13 = scalar_lea.vmem %s1691_s12, 32  ;;  %p1693_p2 = scmp.lt.s32.totalorder %s2426_s20, %s1691_s12 }
  0x1e   : > { %535 = vperm.xlu1 %1621, %v302_v3   ;;  %341 = vperm.xlu0 %1620, %v302_v3   ;;  %v1919_v18 = vld [vmem:[%s1869_s15 + $0xd0] sm:$0xff]  ;;  %v309_v19 = vld [vmem:[%s1869_s15 + $0x40] sm:$0xff]  ;;  %v310_v20 = vld [vmem:[%s1869_s15 + $0x48] sm:$0xff]  ;;  %p1694_p3 = scmp.lt.s32.totalorder %s1692_s13, %s1686_s11 }
  0x1f   : > { %v314_v21 = vld [vmem:[%s1869_s15 + $0x68] sm:$0xff]  ;;  %v315_v22 = vld [vmem:[%s1869_s15 + $0x70] sm:$0xff]  ;;  %v1939_v24 = vld [vmem:[%s1869_s15 + $0x98] sm:$0xff] }
  0x20   : > { %v1935_v23 = vld [vmem:[%s1869_s15 + $0x90] sm:$0xff]  ;;  %v313_v25 = vld [vmem:[%s1869_s15 + $0x60] sm:$0xff]  ;;  %v1946_v26 = vld [vmem:[%s1869_s15 + $0xb8] sm:$0xff]  ;;  %p1695_p5 = por %p1694_p3, %p1693_p2 }
  0x21   : > { %v1951_v27 = vld [vmem:[%s1869_s15 + $0xc0] sm:$0xff]  ;;  %v1961_v29 = vld [vmem:[%s1869_s15 + $0xe8] sm:$0xff]  ;;  %v2005_v55 = vld [vmem:[%s1869_s15 + $0xf0] sm:$0xff] }
  0x22   : > { %539 = vperm.xlu1 %1621, %v303_v4   ;;  %346 = vperm.xlu0 %1620, %v303_v4   ;;  %v1956_v28 = vld [vmem:[%s1869_s15 + $0xe0] sm:$0xff]  ;;  %v318_v49 = vld [vmem:[%s1869_s15 + $0x88] sm:$0xff]  ;;  %v2017_v63 = vld [vmem:[%s1869_s15 + $0xf8] sm:$0xff]  ;;  %p1696_p6 = pnand %p1695_p5, %p1689_p1 }
  0x26   : > { %1622 = vset.pattern.permute.xlu1 %v1768_v6  ;;  %361 = vperm.xlu0 %1620, %v306_v5  }
  0x27   : > { %731 = vperm.xlu1 %1622, %v302_v3  }
  0x2a   : > { %366 = vperm.xlu0 %1620, %v307_v7  }
  0x2b   : > { %1623 = vset.pattern.permute.xlu1 %v1767_v1 }
  0x2c   : > { %351 = vperm.xlu1 %1623, %v304_v8  }
  0x2e   : > { %1629 = vset.pattern.permute.xlu0 %v1768_v6 }
  0x2f   : > { %727 = vperm.xlu0 %1629, %v301_v2  }
  0x30   : > { %1624 = vset.pattern.permute.xlu1 %v1768_v6 }
  0x31   : > { %735 = vperm.xlu1 %1624, %v303_v4  }
  0x33   : > { %747 = vperm.xlu0 %1629, %v306_v5  }
  0x35   : > { %1625 = vset.pattern.permute.xlu1 %v1767_v1 }
  0x36   : > { %356 = vperm.xlu1 %1625, %v305_v9  }
  0x37   : > { %751 = vperm.xlu0 %1629, %v307_v7  }
  0x3a   : > { %1626 = vset.pattern.permute.xlu1 %v1768_v6 }
  0x3b   : > { %739 = vperm.xlu1 %1626, %v304_v8   ;;  %767 = vperm.xlu0 %1629, %v1884_v10  }
  0x3f   : > { %1627 = vset.pattern.permute.xlu1 %v1766_v0  ;;  %771 = vperm.xlu0 %1629, %v1889_v11  }
  0x40   : > { %551 = vperm.xlu1 %1627, %v306_v5  }
  0x43   : > { %787 = vperm.xlu0 %1629, %v1894_v12  }
  0x44   : > { %1628 = vset.pattern.permute.xlu1 %v1768_v6 }
  0x45   : > { %743 = vperm.xlu1 %1628, %v305_v9  }
  0x47   : > { %791 = vperm.xlu0 %1629, %v1899_v13  }
  0x49   : > { %1630 = vset.pattern.permute.xlu1 %v1766_v0 }
  0x4a   : > { %555 = vperm.xlu1 %1630, %v307_v7  }
  0x4b   : > { %807 = vperm.xlu0 %1629, %v1903_v14  }
  0x4e   : > { %1631 = vset.pattern.permute.xlu1 %v1767_v1 }
  0x4f   : > { %371 = vperm.xlu1 %1631, %v308_v15   ;;  %811 = vperm.xlu0 %1629, %v1909_v16  }
  0x53   : > { %1632 = vset.pattern.permute.xlu1 %v1766_v0  ;;  %827 = vperm.xlu0 %1629, %v1914_v17  }
  0x54   : > { %559 = vperm.xlu1 %1632, %v308_v15  }
  0x57   : > { %831 = vperm.xlu0 %1629, %v1919_v18  }
  0x58   : > { %1633 = vset.pattern.permute.xlu1 %v1767_v1 }
  0x59   : > { %376 = vperm.xlu1 %1633, %v309_v19  }
  0x5b   : > { %1669 = vset.pattern.permute.xlu0 %v1766_v0 }
  0x5c   : > { %543 = vperm.xlu0 %1669, %v304_v8  }
  0x5d   : > { %1634 = vset.pattern.permute.xlu1 %v1768_v6 }
  0x5e   : > { %755 = vperm.xlu1 %1634, %v308_v15  }
  0x60   : > { %547 = vperm.xlu0 %1669, %v305_v9  }
  0x62   : > { %1635 = vset.pattern.permute.xlu1 %v1767_v1 }
  0x63   : > { %381 = vperm.xlu1 %1635, %v310_v20  }
  0x64   : > { %563 = vperm.xlu0 %1669, %v309_v19  }
  0x67   : > { %1636 = vset.pattern.permute.xlu1 %v1768_v6 }
  0x68   : > { %759 = vperm.xlu1 %1636, %v309_v19   ;;  %567 = vperm.xlu0 %1669, %v310_v20  }
  0x6c   : > { %1637 = vset.pattern.permute.xlu1 %v1766_v0  ;;  %583 = vperm.xlu0 %1669, %v314_v21  }
  0x6d   : > { %571 = vperm.xlu1 %1637, %v1884_v10  }
  0x70   : > { %587 = vperm.xlu0 %1669, %v315_v22  }
  0x71   : > { %1638 = vset.pattern.permute.xlu1 %v1768_v6 }
  0x72   : > { %763 = vperm.xlu1 %1638, %v310_v20  }
  0x74   : > { %603 = vperm.xlu0 %1669, %v1935_v23  }
  0x76   : > { %1639 = vset.pattern.permute.xlu1 %v1766_v0 }
  0x77   : > { %575 = vperm.xlu1 %1639, %v1889_v11  }
  0x78   : > { %607 = vperm.xlu0 %1669, %v1939_v24  }
  0x7b   : > { %1640 = vset.pattern.permute.xlu1 %v1767_v1 }
  0x7c   : > { %396 = vperm.xlu1 %1640, %v313_v25   ;;  %623 = vperm.xlu0 %1669, %v1946_v26  }
  0x80   : > { %1641 = vset.pattern.permute.xlu1 %v1766_v0  ;;  %627 = vperm.xlu0 %1669, %v1951_v27  }
  0x81   : > { %579 = vperm.xlu1 %1641, %v313_v25  }
  0x84   : > { %643 = vperm.xlu0 %1669, %v1956_v28  }
  0x85   : > { %1642 = vset.pattern.permute.xlu1 %v1767_v1 }
  0x86   : > { %401 = vperm.xlu1 %1642, %v314_v21  }
  0x88   : > { %647 = vperm.xlu0 %1669, %v1961_v29  }
  0x8a   : > { %1643 = vset.pattern.permute.xlu1 %v1768_v6 }
  0x8b   : > { %775 = vperm.xlu1 %1643, %v313_v25  }
  0x8c   : > { %1673 = vset.pattern.permute.xlu0 %v1767_v1 }
  0x8d   : > { %386 = vperm.xlu0 %1673, %v1884_v10  }
  0x8f   : > { %1644 = vset.pattern.permute.xlu1 %v1767_v1 }
  0x90   : > { %406 = vperm.xlu1 %1644, %v315_v22  }
  0x91   : > { %391 = vperm.xlu0 %1673, %v1889_v11  }
  0x94   : > { %1645 = vset.pattern.permute.xlu1 %v1768_v6 }
  0x95   : > { %779 = vperm.xlu1 %1645, %v314_v21   ;;  %411 = vperm.xlu0 %1673, %v1894_v12  }
  0x99   : > { %1646 = vset.pattern.permute.xlu1 %v1766_v0  ;;  %v532_v32 = vpop.permute.xlu1 %531  ;;  %v337_v33 = vpop.permute.xlu0 %336  ;;  %416 = vperm.xlu0 %1673, %v1899_v13  }
  0x9a   : > { %591 = vperm.xlu1 %1646, %v1894_v12   ;;  %v662_v56 = vmul.f32 %v1979_v40, %v532_v32  ;;  %v498_v57 = vmul.f32 %v1981_v41, %v337_v33 }
  0x9c   : > { %v694_v2 = vadd.f32 %v662_v56, %v498_v57 }
  0x9d   : > { %v536_v36 = vpop.permute.xlu1 %535  ;;  %v342_v37 = vpop.permute.xlu0 %341  ;;  %436 = vperm.xlu0 %1673, %v1903_v14  }
  0x9e   : > { %1647 = vset.pattern.permute.xlu1 %v1768_v6  ;;  %v663_v44 = vmul.f32 %v1979_v40, %v536_v36  ;;  %v499_v45 = vmul.f32 %v1981_v41, %v342_v37 }
  0x9f   : > { %783 = vperm.xlu1 %1647, %v315_v22  }
  0xa0   : > { %v695_v50 = vadd.f32 %v663_v44, %v499_v45 }
  0xa1   : > { %v540_v42 = vpop.permute.xlu1 %539  ;;  %v347_v43 = vpop.permute.xlu0 %346  ;;  %441 = vperm.xlu0 %1673, %v1909_v16  }
  0xa2   : > { %v664_v59 = vmul.f32 %v1979_v40, %v540_v42  ;;  %v500_v60 = vmul.f32 %v1981_v41, %v347_v43 }
  0xa3   : > { %1648 = vset.pattern.permute.xlu1 %v1766_v0 }
  0xa4   : > { %595 = vperm.xlu1 %1648, %v1899_v13   ;;  %v696_v5 = vadd.f32 %v664_v59, %v500_v60 }
  0xa5   : > { %v1990_v47 = vpop.permute.xlu0 %361  ;;  %461 = vperm.xlu0 %1673, %v1914_v17  }
  0xa6   : > { %v732_v48 = vpop.permute.xlu1 %731  ;;  %v503_v39 = vmul.f32 %v1981_v41, %v1990_v47 }
  0xa7   : > { %v859_v51 = vmul.f32 %v1987_v46, %v732_v48 }
  0xa8   : > { %1649 = vset.pattern.permute.xlu1 %v1767_v1 }
  0xa9   : > { %v891_v52 = vadd.f32 %v859_v51, %v695_v50  ;;  %421 = vperm.xlu1 %1649, %v318_v49   ;;  %v1996_v53 = vpop.permute.xlu0 %366  ;;  %466 = vperm.xlu0 %1673, %v1919_v18  }
  0xaa   : > { %v504_v47 = vmul.f32 %v1981_v41, %v1996_v53 }
  0xab   : > { %v2009_v58 = vpop.permute.xlu1 %351  ;;  %v930_v61 = vadd.f32 %v2002_v54, %v891_v52 }
  0xad   : > { %1650 = vset.pattern.permute.xlu1 %v1766_v0  ;;  %486 = vperm.xlu0 %1673, %v2005_v55   ;;  %v994_v9 = vmul.f32 0.01, %v930_v61  ;;  %vm962_vm0 = vcmp.ge.f32.partialorder %v930_v61, 0.0 }
  0xae   : > { %599 = vperm.xlu1 %1650, %v318_v49   ;;  %v728_v62 = vpop.permute.xlu0 %727 }
  0xaf   : > { %v858_v3 = vmul.f32 %v1987_v46, %v728_v62  ;;  %v2029_v20 = vsel %vm962_vm0, %v930_v61, %v994_v9 }
  0xb0   : > { %v736_v4 = vpop.permute.xlu1 %735  ;;  %v1060_v31 = vsel %vm1058_vm1, %v2029_v20, 0.0 }
  0xb1   : > { %v890_v7 = vadd.f32 %v858_v3, %v694_v2  ;;  %v860_v8 = vmul.f32 %v1987_v46, %v736_v4  ;;  %491 = vperm.xlu0 %1673, %v2017_v63   ;;  %v323_v3 = vld [vmem:[%s1869_s15 + $0xb0] sm:$0xff] }
  0xb2   : > { %1651 = vset.pattern.permute.xlu1 %v1767_v1  ;;  %v748_v10 = vpop.permute.xlu0 %747 }
  0xb3   : > { %v929_v11 = vadd.f32 %v2002_v54, %v890_v7  ;;  %v892_v12 = vadd.f32 %v860_v8, %v696_v5  ;;  %426 = vperm.xlu1 %1651, %v1935_v23   ;;  %v863_v44 = vmul.f32 %v1987_v46, %v748_v10 }
  0xb5   : > { %v931_v13 = vadd.f32 %v2002_v54, %v892_v12  ;;  %v2026_v15 = vpop.permute.xlu1 %356  ;;  %1678 = vset.pattern.permute.xlu0 %v1768_v6  ;;  %vm961_vm2 = vcmp.ge.f32.partialorder %v929_v11, 0.0  ;;  %v993_v19 = vmul.f32 0.01, %v929_v11 }
  0xb6   : > { %v752_v21 = vpop.permute.xlu0 %751  ;;  %847 = vperm.xlu0 %1678, %v2005_v55  }
  0xb7   : > { %vm963_vm3 = vcmp.ge.f32.partialorder %v931_v13, 0.0  ;;  %v995_v22 = vmul.f32 0.01, %v931_v13  ;;  %1652 = vset.pattern.permute.xlu1 %v1768_v6  ;;  %v2033_v25 = vsel %vm961_vm2, %v929_v11, %v993_v19  ;;  %v864_v57 = vmul.f32 %v1987_v46, %v752_v21 }
  0xb8   : > { %795 = vperm.xlu1 %1652, %v318_v49   ;;  %v1059_v30 = vsel %vm1058_vm1, %v2033_v25, 0.0  ;;  %v1133_v32 = vpack.c.bf16 %v2029_v20, %v2033_v25 }
  0xb9   : > { %v2041_v33 = vsel %vm963_vm3, %v931_v13, %v995_v22  ;;  %v1061_v34 = vadd.f32 %v1060_v31, %v1059_v30  ;;  %v502_v30 = vmul.f32 %v1981_v41, %v2026_v15 }
  0xba   : > { %v740_v35 = vpop.permute.xlu1 %739  ;;  %v2043_v36 = vpop.permute.xlu0 %767  ;;  %v1062_v37 = vsel %vm1058_vm1, %v2041_v33, 0.0 }
  0xbb   : > { %v2047_v38 = vadd.f32 %v1062_v37, %v1061_v34  ;;  %v861_v12 = vmul.f32 %v1987_v46, %v740_v35 }
  0xbc   : > { %1653 = vset.pattern.permute.xlu1 %v1767_v1 }
  0xbd   : > { %431 = vperm.xlu1 %1653, %v1939_v24  }
  0xbe   : > { %v2053_v42 = vpop.permute.xlu0 %771 }
  0xbf   : > { %v552_v43 = vpop.permute.xlu1 %551 }
  0xc0   : > { %v667_v45 = vmul.f32 %v1979_v40, %v552_v43 }
  0xc1   : > { %1654 = vset.pattern.permute.xlu1 %v1768_v6 }
  0xc2   : > { %v699_v48 = vadd.f32 %v667_v45, %v503_v39  ;;  %799 = vperm.xlu1 %1654, %v1935_v23   ;;  %v2059_v49 = vpop.permute.xlu0 %787 }
  0xc4   : > { %v895_v50 = vadd.f32 %v863_v44, %v699_v48  ;;  %v744_v51 = vpop.permute.xlu1 %743 }
  0xc5   : > { %v862_v48 = vmul.f32 %v1987_v46, %v744_v51 }
  0xc6   : > { %1655 = vset.pattern.permute.xlu1 %v1766_v0  ;;  %v2062_v52 = vpop.permute.xlu0 %791  ;;  %v934_v37 = vadd.f32 %v2002_v54, %v895_v50 }
  0xc7   : > { %611 = vperm.xlu1 %1655, %v1903_v14  }
  0xc8   : > { %vm966_vm7 = vcmp.ge.f32.partialorder %v934_v37, 0.0 }
  0xc9   : > { %v556_v56 = vpop.permute.xlu1 %555 }
  0xca   : > { %v668_v59 = vmul.f32 %v1979_v40, %v556_v56  ;;  %v2069_v23 = vpop.permute.xlu0 %807 }
  0xcb   : > { %1656 = vset.pattern.permute.xlu1 %v1768_v6 }
  0xcc   : > { %v700_v60 = vadd.f32 %v668_v59, %v504_v47  ;;  %803 = vperm.xlu1 %1656, %v1939_v24  }
  0xce   : > { %v896_v61 = vadd.f32 %v864_v57, %v700_v60  ;;  %v372_v62 = vpop.permute.xlu1 %371  ;;  %v2073_v2 = vpop.permute.xlu0 %811  ;;  %v998_v60 = vmul.f32 0.01, %v934_v37 }
  0xcf   : > { %v505_v4 = vmul.f32 %v1981_v41, %v372_v62 }
  0xd0   : > { %1657 = vset.pattern.permute.xlu1 %v1766_v0  ;;  %v935_v13 = vadd.f32 %v2002_v54, %v896_v61 }
  0xd1   : > { %615 = vperm.xlu1 %1657, %v1909_v16   ;;  %v501_v16 = vmul.f32 %v1981_v41, %v2009_v58 }
  0xd2   : > { %v2077_v14 = vpop.permute.xlu0 %827  ;;  %v999_v35 = vmul.f32 0.01, %v935_v13  ;;  %vm967_vm4 = vcmp.ge.f32.partialorder %v935_v13, 0.0 }
  0xd3   : > { %v560_v53 = vpop.permute.xlu1 %559 }
  0xd4   : > { %v669_v5 = vmul.f32 %v1979_v40, %v560_v53  ;;  %v2104_v61 = vsel %vm967_vm4, %v935_v13, %v999_v35  ;;  %vm299_vm4 = vcmask 516096  }
  0xd5   : > { %1658 = vset.pattern.permute.xlu1 %v1767_v1 }
  0xd6   : > { %v701_v7 = vadd.f32 %v669_v5, %v505_v4  ;;  %446 = vperm.xlu1 %1658, %v323_v3   ;;  %v2083_v24 = vpop.permute.xlu0 %831 }
  0xd8   : > { %v377_v8 = vpop.permute.xlu1 %376 }
  0xd9   : > { %v506_v50 = vmul.f32 %v1981_v41, %v377_v8 }
  0xda   : > { %1659 = vset.pattern.permute.xlu1 %v1766_v0 }
  0xdb   : > { %619 = vperm.xlu1 %1659, %v323_v3   ;;  %v544_v9 = vpop.permute.xlu0 %543 }
  0xdc   : > { %v665_v10 = vmul.f32 %v1979_v40, %v544_v9 }
  0xdd   : > { %v756_v11 = vpop.permute.xlu1 %755 }
  0xde   : > { %v697_v19 = vadd.f32 %v665_v10, %v501_v16  ;;  %v865_v21 = vmul.f32 %v1987_v46, %v756_v11 }
  0xdf   : > { %1660 = vset.pattern.permute.xlu1 %v1767_v1  ;;  %v548_v22 = vpop.permute.xlu0 %547 }
  0xe0   : > { %v893_v31 = vadd.f32 %v861_v12, %v697_v19  ;;  %v897_v34 = vadd.f32 %v865_v21, %v701_v7  ;;  %v666_v58 = vmul.f32 %v1979_v40, %v548_v22  ;;  %451 = vperm.xlu1 %1660, %v1946_v26   ;;  %v2124_v22 = vsel %vm966_vm7, %v934_v37, %v998_v60 }
  0xe2   : > { %v932_v39 = vadd.f32 %v2002_v54, %v893_v31  ;;  %v936_v43 = vadd.f32 %v2002_v54, %v897_v34  ;;  %v698_v44 = vadd.f32 %v666_v58, %v502_v30  ;;  %v382_v45 = vpop.permute.xlu1 %381 }
  0xe3   : > { %v564_v47 = vpop.permute.xlu0 %563  ;;  %v507_v4 = vmul.f32 %v1981_v41, %v382_v45 }
  0xe4   : > { %vm964_vm5 = vcmp.ge.f32.partialorder %v932_v39, 0.0  ;;  %v996_v15 = vmul.f32 0.01, %v932_v39  ;;  %vm968_vm6 = vcmp.ge.f32.partialorder %v936_v43, 0.0  ;;  %v1000_v56 = vmul.f32 0.01, %v936_v43  ;;  %1661 = vset.pattern.permute.xlu1 %v1768_v6 }
  0xe5   : > { %v894_v57 = vadd.f32 %v862_v48, %v698_v44  ;;  %v670_v59 = vmul.f32 %v1979_v40, %v564_v47  ;;  %815 = vperm.xlu1 %1661, %v323_v3   ;;  %v1070_v48 = vsel %vm1058_vm1, %v2104_v61, 0.0 }
  0xe6   : > { %v2106_v62 = vsel %vm964_vm5, %v932_v39, %v996_v15  ;;  %v2108_v51 = vsel %vm968_vm6, %v936_v43, %v1000_v56  ;;  %v1068_v43 = vsel %vm1058_vm1, %v2124_v22, 0.0  ;;  %vm1771_vm6 = vmmov 0  }
  0xe7   : > { %v933_v53 = vadd.f32 %v2002_v54, %v894_v57  ;;  %v702_v5 = vadd.f32 %v670_v59, %v506_v50  ;;  %v760_v7 = vpop.permute.xlu1 %759  ;;  %v568_v9 = vpop.permute.xlu0 %567  ;;  %v1064_v8 = vsel %vm1058_vm1, %v2106_v62, 0.0  ;;  %v1134_v11 = vpack.c.bf16 %v2106_v62, %v2041_v33 }
  0xe8   : > { %v866_v16 = vmul.f32 %v1987_v46, %v760_v7  ;;  %v671_v3 = vmul.f32 %v1979_v40, %v568_v9  ;;  %v1065_v10 = vadd.f32 %v1064_v8, %v2047_v38  ;;  %v1136_v13 = vpack.c.bf16 %v2108_v51, %v2104_v61 }
  0xe9   : > { %vm965_vm8 = vcmp.ge.f32.partialorder %v933_v53, 0.0  ;;  %v997_v12 = vmul.f32 0.01, %v933_v53  ;;  %1662 = vset.pattern.permute.xlu1 %v1767_v1  ;;  %v1072_v50 = vsel %vm1058_vm1, %v2108_v51, 0.0 }
  0xea   : > { %v898_v19 = vadd.f32 %v866_v16, %v702_v5  ;;  %v703_v21 = vadd.f32 %v671_v3, %v507_v4  ;;  %456 = vperm.xlu1 %1662, %v1951_v27  }
  0xeb   : > { %v2126_v30 = vsel %vm965_vm8, %v933_v53, %v997_v12  ;;  %v584_v38 = vpop.permute.xlu0 %583 }
  0xec   : > { %v1066_v31 = vsel %vm1058_vm1, %v2126_v30, 0.0  ;;  %v937_v34 = vadd.f32 %v2002_v54, %v898_v19  ;;  %v572_v58 = vpop.permute.xlu1 %571  ;;  %v1135_v35 = vpack.c.bf16 %v2124_v22, %v2126_v30 }
  0xed   : > { %v1067_v39 = vadd.f32 %v1066_v31, %v1065_v10  ;;  %v328_v31 = vld [vmem:[%s1869_s15 + $0xd8] sm:$0xff] }
  0xee   : > { %vm969_vm9 = vcmp.ge.f32.partialorder %v937_v34, 0.0  ;;  %v1001_v44 = vmul.f32 0.01, %v937_v34  ;;  %1663 = vset.pattern.permute.xlu1 %v1768_v6  ;;  %v1164_v33 = vsel %vm1058_vm1, %v1135_v35, 0 }
  0xef   : > { %819 = vperm.xlu1 %1663, %v1946_v26   ;;  %v588_v37 = vpop.permute.xlu0 %587  ;;  %v1069_v45 = vadd.f32 %v1068_v43, %v1067_v39 }
  0xf0   : > { %v2139_v47 = vsel %vm969_vm9, %v937_v34, %v1001_v44 }
  0xf1   : > { %v764_v15 = vpop.permute.xlu1 %763  ;;  %v1071_v56 = vadd.f32 %v1070_v48, %v1069_v45  ;;  %v1074_v26 = vsel %vm1058_vm1, %v2139_v47, 0.0  ;;  %v675_v45 = vmul.f32 %v1979_v40, %v584_v38  ;;  %v672_v38 = vmul.f32 %v1979_v40, %v572_v58 }
  0xf2   : > { %v867_v57 = vmul.f32 %v1987_v46, %v764_v15 }
  0xf3   : > { %1664 = vset.pattern.permute.xlu1 %v1766_v0  ;;  %v2145_v59 = vpop.permute.xlu0 %603  ;;  %v1073_v60 = vadd.f32 %v1072_v50, %v1071_v56 }
  0xf4   : > { %v899_v53 = vadd.f32 %v867_v57, %v703_v21  ;;  %631 = vperm.xlu1 %1664, %v1914_v17  }
  0xf5   : > { %v1075_v4 = vadd.f32 %v1074_v26, %v1073_v60  ;;  %v868_v26 = vmul.f32 %v1987_v46, %v2043_v36 }
  0xf6   : > { %v938_v5 = vadd.f32 %v2002_v54, %v899_v53  ;;  %v576_v7 = vpop.permute.xlu1 %575 }
  0xf7   : > { %v2151_v9 = vpop.permute.xlu0 %607 }
  0xf8   : > { %vm970_vm10 = vcmp.ge.f32.partialorder %v938_v5, 0.0  ;;  %v1002_v8 = vmul.f32 0.01, %v938_v5  ;;  %1665 = vset.pattern.permute.xlu1 %v1768_v6 }
  0xf9   : > { %823 = vperm.xlu1 %1665, %v1951_v27  }
  0xfa   : > { %v2155_v16 = vsel %vm970_vm10, %v938_v5, %v1002_v8  ;;  %v676_v5 = vmul.f32 %v1979_v40, %v588_v37 }
  0xfb   : > { %v1076_v3 = vsel %vm1058_vm1, %v2155_v16, 0.0  ;;  %v397_v10 = vpop.permute.xlu1 %396  ;;  %v2159_v17 = vpop.permute.xlu0 %623  ;;  %v1137_v12 = vpack.c.bf16 %v2155_v16, %v2139_v47 }
  0xfc   : > { %v2163_v19 = vadd.f32 %v1076_v3, %v1075_v4  ;;  %v510_v34 = vmul.f32 %v1981_v41, %v397_v10  ;;  %v685_v22 = vmul.f32 %v1979_v40, %v2159_v17 }
  0xfd   : > { %1666 = vset.pattern.permute.xlu1 %v1766_v0 }
  0xfe   : > { %635 = vperm.xlu1 %1666, %v1919_v18  }
  0xff   : > { %v2167_v21 = vpop.permute.xlu0 %627 }
 0x100   : > { %v580_v27 = vpop.permute.xlu1 %579 }
 0x101   : > { %v674_v39 = vmul.f32 %v1979_v40, %v580_v27 }
 0x102   : > { %1667 = vset.pattern.permute.xlu1 %v1767_v1 }
 0x103   : > { %v706_v43 = vadd.f32 %v674_v39, %v510_v34  ;;  %471 = vperm.xlu1 %1667, %v328_v31   ;;  %v2173_v44 = vpop.permute.xlu0 %643  ;;  %v869_v34 = vmul.f32 %v1987_v46, %v2053_v42  ;;  %v673_v39 = vmul.f32 %v1979_v40, %v576_v7 }
 0x105   : > { %v402_v48 = vpop.permute.xlu1 %401 }
 0x106   : > { %v511_v15 = vmul.f32 %v1981_v41, %v402_v48 }
 0x107   : > { %1668 = vset.pattern.permute.xlu1 %v1766_v0  ;;  %v2178_v18 = vpop.permute.xlu0 %647 }
 0x108   : > { %v707_v56 = vadd.f32 %v675_v45, %v511_v15  ;;  %639 = vperm.xlu1 %1668, %v328_v31  }
 0x10a   : > { %v776_v50 = vpop.permute.xlu1 %775 }
 0x10b   : > { %v870_v57 = vmul.f32 %v1987_v46, %v776_v50 }
 0x10c   : > { %1670 = vset.pattern.permute.xlu1 %v1767_v1  ;;  %v387_v60 = vpop.permute.xlu0 %386 }
 0x10d   : > { %v902_v53 = vadd.f32 %v870_v57, %v706_v43  ;;  %v508_v4 = vmul.f32 %v1981_v41, %v387_v60  ;;  %476 = vperm.xlu1 %1670, %v1956_v28  }
 0x10f   : > { %v704_v8 = vadd.f32 %v672_v38, %v508_v4  ;;  %v407_v3 = vpop.permute.xlu1 %406  ;;  %v941_v45 = vadd.f32 %v2002_v54, %v902_v53 }
 0x110   : > { %v512_v10 = vmul.f32 %v1981_v41, %v407_v3  ;;  %v392_v27 = vpop.permute.xlu0 %391 }
 0x111   : > { %v900_v36 = vadd.f32 %v868_v26, %v704_v8  ;;  %v509_v58 = vmul.f32 %v1981_v41, %v392_v27  ;;  %1671 = vset.pattern.permute.xlu1 %v1768_v6  ;;  %v1005_v7 = vmul.f32 0.01, %v941_v45  ;;  %vm973_vm12 = vcmp.ge.f32.partialorder %v941_v45, 0.0 }
 0x112   : > { %v708_v43 = vadd.f32 %v676_v5, %v512_v10  ;;  %835 = vperm.xlu1 %1671, %v328_v31  }
 0x113   : > { %v939_v37 = vadd.f32 %v2002_v54, %v900_v36  ;;  %v705_v48 = vadd.f32 %v673_v39, %v509_v58  ;;  %v2210_v27 = vsel %vm973_vm12, %v941_v45, %v1005_v7 }
 0x114   : > { %v780_v15 = vpop.permute.xlu1 %779  ;;  %v412_v60 = vpop.permute.xlu0 %411  ;;  %v1082_v45 = vsel %vm1058_vm1, %v2210_v27, 0.0 }
 0x115   : > { %vm971_vm11 = vcmp.ge.f32.partialorder %v939_v37, 0.0  ;;  %v1003_v50 = vmul.f32 0.01, %v939_v37  ;;  %v901_v57 = vadd.f32 %v869_v34, %v705_v48  ;;  %v871_v42 = vmul.f32 %v1987_v46, %v780_v15 }
 0x116   : > { %1672 = vset.pattern.permute.xlu1 %v1767_v1  ;;  %v513_v4 = vmul.f32 %v1981_v41, %v412_v60  ;;  %v873_v1 = vmul.f32 %v1987_v46, %v2059_v49 }
 0x117   : > { %v2198_v26 = vsel %vm971_vm11, %v939_v37, %v1003_v50  ;;  %v940_v38 = vadd.f32 %v2002_v54, %v901_v57  ;;  %v903_v31 = vadd.f32 %v871_v42, %v707_v56  ;;  %481 = vperm.xlu1 %1672, %v1961_v29  }
 0x118   : > { %v1078_v53 = vsel %vm1058_vm1, %v2198_v26, 0.0  ;;  %v417_v42 = vpop.permute.xlu0 %416 }
 0x119   : > { %vm972_vm13 = vcmp.ge.f32.partialorder %v940_v38, 0.0  ;;  %v1004_v5 = vmul.f32 0.01, %v940_v38  ;;  %v942_v8 = vadd.f32 %v2002_v54, %v903_v31  ;;  %v592_v3 = vpop.permute.xlu1 %591  ;;  %v1079_v56 = vadd.f32 %v1078_v53, %v2163_v19 }
 0x11a   : > { %v677_v10 = vmul.f32 %v1979_v40, %v592_v3  ;;  %v514_v53 = vmul.f32 %v1981_v41, %v417_v42 }
 0x11b   : > { %v2212_v34 = vsel %vm972_vm13, %v940_v38, %v1004_v5  ;;  %vm974_vm14 = vcmp.ge.f32.partialorder %v942_v8, 0.0  ;;  %v1006_v39 = vmul.f32 0.01, %v942_v8  ;;  %1674 = vset.pattern.permute.xlu1 %v1768_v6 }
 0x11c   : > { %v1080_v36 = vsel %vm1058_vm1, %v2212_v34, 0.0  ;;  %v709_v58 = vadd.f32 %v677_v10, %v513_v4  ;;  %839 = vperm.xlu1 %1674, %v1956_v28   ;;  %v1138_v49 = vpack.c.bf16 %v2212_v34, %v2198_v26  ;;  %v874_v10 = vmul.f32 %v1987_v46, %v2062_v52 }
 0x11d   : > { %v2220_v37 = vsel %vm974_vm14, %v942_v8, %v1006_v39  ;;  %v1081_v19 = vadd.f32 %v1080_v36, %v1079_v56  ;;  %v691_v26 = vmul.f32 %v1979_v40, %v2178_v18 }
 0x11e   : > { %v905_v48 = vadd.f32 %v873_v1, %v709_v58  ;;  %v784_v15 = vpop.permute.xlu1 %783  ;;  %v1139_v50 = vpack.c.bf16 %v2220_v37, %v2210_v27  ;;  %v1084_v28 = vsel %vm1058_vm1, %v2220_v37, 0.0 }
 0x11f   : > { %v872_v57 = vmul.f32 %v1987_v46, %v784_v15  ;;  %v1083_v60 = vadd.f32 %v1082_v45, %v1081_v19 }
 0x120   : > { %v944_v7 = vadd.f32 %v2002_v54, %v905_v48  ;;  %1675 = vset.pattern.permute.xlu1 %v1766_v0 }
 0x121   : > { %v904_v38 = vadd.f32 %v872_v57, %v708_v43  ;;  %651 = vperm.xlu1 %1675, %v2005_v55   ;;  %v1085_v31 = vadd.f32 %v1084_v28, %v1083_v60 }
 0x122   : > { %v1008_v4 = vmul.f32 0.01, %v944_v7  ;;  %vm976_vm15 = vcmp.ge.f32.partialorder %v944_v7, 0.0 }
 0x123   : > { %v943_v5 = vadd.f32 %v2002_v54, %v904_v38  ;;  %v596_v8 = vpop.permute.xlu1 %595 }
 0x124   : > { %v678_v3 = vmul.f32 %v1979_v40, %v596_v8  ;;  %v2239_v55 = vsel %vm976_vm15, %v944_v7, %v1008_v4 }
 0x125   : > { %vm975_vm0 = vcmp.ge.f32.partialorder %v943_v5, 0.0  ;;  %v1007_v1 = vmul.f32 0.01, %v943_v5  ;;  %1676 = vset.pattern.permute.xlu1 %v1768_v6  ;;  %v1088_v48 = vsel %vm1058_vm1, %v2239_v55, 0.0 }
 0x126   : > { %v710_v43 = vadd.f32 %v678_v3, %v514_v53  ;;  %843 = vperm.xlu1 %1676, %v1961_v29  }
 0x127   : > { %v2241_v56 = vsel %vm975_vm0, %v943_v5, %v1007_v1 }
 0x128   : > { %v1086_v39 = vsel %vm1058_vm1, %v2241_v56, 0.0  ;;  %v906_v36 = vadd.f32 %v874_v10, %v710_v43  ;;  %v422_v58 = vpop.permute.xlu1 %421  ;;  %v1140_v19 = vpack.c.bf16 %v2239_v55, %v2241_v56  ;;  %v1256_v43 = vld [vmem:[%s2476_s4] sm:$0xff] }
 0x129   : > { %v1087_v45 = vadd.f32 %v1086_v39, %v1085_v31  ;;  %v515_v31 = vmul.f32 %v1981_v41, %v422_v58  ;;  %v1257_v39 = vld [vmem:[%s2476_s4 + $0x8] sm:$0xff]  ;;  %v1680_v55 = vld [vmem:[%s2475_s3] sm:$0xff]  }
 0x12a   : > { %v945_v52 = vadd.f32 %v2002_v54, %v906_v36  ;;  %1677 = vset.pattern.permute.xlu1 %v1766_v0  ;;  %v1258_v36 = vld [vmem:[%s2476_s4 + $0x10] sm:$0xff]  ;;  %v1179_v27 = vsel %vm1058_vm1, %v1140_v19, 0  ;;  %1509 = vmatprep.mubr.msk.bf16.mxu0 %vm1058_vm1, %v1680_v55 }
 0x12b   : > { %655 = vperm.xlu1 %1677, %v2017_v63   ;;  %v1089_v29 = vadd.f32 %v1088_v48, %v1087_v45  ;;  %v1769_v48 = vmov 0.0|0.0  }
 0x12c   : > { %vm977_vm2 = vcmp.ge.f32.partialorder %v945_v52, 0.0  ;;  %v1009_v15 = vmul.f32 0.01, %v945_v52  ;;  %1539 = vmatprep.subr.bf16.mxu1 %v1769_v48 }
 0x12d   : > { %v600_v57 = vpop.permute.xlu1 %599 }
 0x12e   : > { %v1041_v42 = vsel %vm977_vm2, %v945_v52, %v1009_v15  ;;  %v679_v38 = vmul.f32 %v1979_v40, %v600_v57  ;;  %v1540_v52 = vpack.c.bf16 %v1257_v39, %v1256_v43  ;;  %v1770_v15 = vmov 0.0  }
 0x12f   : > { %1679 = vset.pattern.permute.xlu1 %v1768_v6  ;;  %v1090_v60 = vsel %vm1058_vm1, %v1041_v42, 0.0  ;;  %v680_v6 = vmul.f32 %v1979_v40, %v2145_v59  ;;  %300 = vst.msk [vmem:[#allocation2] sm:$0x1] %vm299_vm4, %v1770_v15  ;;  %v878_v43 = vmul.f32 %v1987_v46, %v2069_v23  ;;  %1536 = vmatprep.mubr.msk.f32.mxu1 %vm1771_vm6, %v1770_v15  ;;  %vm1337_vm6 = vcmask 122880  }
 0x130   : > { %851 = vperm.xlu1 %1679, %v2017_v63   ;;  %v1091_v28 = vadd.f32 %v1090_v60, %v1089_v29  ;;  %v711_v53 = vadd.f32 %v679_v38, %v515_v31  ;;  %v1259_v29 = vld [vmem:[%s2476_s4 + $0x18] sm:$0xff]  ;;  %v437_v38 = vpop.permute.xlu0 %436  ;;  %1541 = vmatpush3.bf16.msra.mxu1 %v1540_v52 }
 0x131   : > { %v1543_v31 = vpack.c.bf16 %v1259_v29, %v1258_v36  ;;  %1542 = vmatprep.subr.bf16.mxu1 %v1769_v48 }
 0x132   : > { %v427_v7 = vpop.permute.xlu1 %426 }
 0x133   : > { %v516_v1 = vmul.f32 %v1981_v41, %v427_v7 }
 0x134   : > { %1544 = vmatpush3.bf16.msra.mxu1 %v1543_v31 }
 0x135   : > { %v712_v57 = vadd.f32 %v680_v6, %v516_v1  ;;  %1545 = vmatprep.subr.bf16.mxu1 %v1769_v48 }
 0x137   : > { %v796_v0 = vpop.permute.xlu1 %795 }
 0x138   : > { %v875_v4 = vmul.f32 %v1987_v46, %v796_v0 }
 0x13a   : > { %v907_v5 = vadd.f32 %v875_v4, %v711_v53  ;;  %v1260_v53 = vld [vmem:[%s2476_s4 + $0x20] sm:$0xff]  ;;  %v518_v4 = vmul.f32 %v1981_v41, %v437_v38 }
 0x13c   : > { %v946_v8 = vadd.f32 %v2002_v54, %v907_v5  ;;  %v432_v3 = vpop.permute.xlu1 %431 }
 0x13d   : > { %v517_v6 = vmul.f32 %v1981_v41, %v432_v3 }
 0x13e   : > { %vm978_vm3 = vcmp.ge.f32.partialorder %v946_v8, 0.0  ;;  %v1010_v63 = vmul.f32 0.01, %v946_v8 }
 0x140   : > { %v1042_v10 = vsel %vm978_vm3, %v946_v8, %v1010_v63  ;;  %v681_v8 = vmul.f32 %v1979_v40, %v2151_v9  ;;  %v1262_v63 = vld [vmem:[%s2476_s4 + $0x30] sm:$0xff] }
 0x141   : > { %v800_v58 = vpop.permute.xlu1 %799  ;;  %v1092_v59 = vsel %vm1058_vm1, %v1042_v10, 0.0  ;;  %v1141_v45 = vpack.c.bf16 %v1042_v10, %v1041_v42  ;;  %v1158_v42 = vsel %vm1058_vm1, %v1133_v32, 0  ;;  %v1263_v10 = vld [vmem:[%s2476_s4 + $0x38] sm:$0xff] }
 0x142   : > { %v876_v60 = vmul.f32 %v1987_v46, %v800_v58  ;;  %v1093_v7 = vadd.f32 %v1092_v59, %v1091_v28  ;;  %v1261_v28 = vld [vmem:[%s2476_s4 + $0x28] sm:$0xff]  ;;  %v1549_v59 = vpack.c.bf16 %v1263_v10, %v1262_v63 }
 0x143   : > { %1551 = vmatprep.subr.msk.bf16.mxu0 %vm1058_vm1, %v1141_v45  ;;  %v1546_v32 = vpack.c.bf16 %v1261_v28, %v1260_v53  ;;  %v713_v45 = vadd.f32 %v681_v8, %v517_v6 }
 0x144   : > { %v908_v0 = vadd.f32 %v876_v60, %v712_v57  ;;  %1494 = vmatpush3.bf16.xpose.msra.mxu0 %v1158_v42  ;;  %v442_v57 = vpop.permute.xlu0 %441 }
 0x145   : > { %1547 = vmatpush3.bf16.msra.mxu1 %v1546_v32  ;;  %v519_v23 = vmul.f32 %v1981_v41, %v442_v57 }
 0x146   : > { %v947_v5 = vadd.f32 %v2002_v54, %v908_v0  ;;  %v612_v20 = vpop.permute.xlu1 %611  ;;  %1548 = vmatprep.subr.bf16.mxu1 %v1769_v48 }
 0x147   : > { %v682_v25 = vmul.f32 %v1979_v40, %v612_v20 }
 0x148   : > { %vm979_vm5 = vcmp.ge.f32.partialorder %v947_v5, 0.0  ;;  %v1011_v1 = vmul.f32 0.01, %v947_v5 }
 0x149   : > { %v714_v39 = vadd.f32 %v682_v25, %v518_v4  ;;  %1550 = vmatpush3.bf16.msra.mxu1 %v1549_v59 }
 0x14a   : > { %v1043_v36 = vsel %vm979_vm5, %v947_v5, %v1011_v1  ;;  %v1161_v1 = vsel %vm1058_vm1, %v1134_v11, 0 }
 0x14b   : > { %v1094_v9 = vsel %vm1058_vm1, %v1043_v36, 0.0  ;;  %v910_v58 = vadd.f32 %v878_v43, %v714_v39  ;;  %v804_v3 = vpop.permute.xlu1 %803 }
 0x14c   : > { %v1095_v52 = vadd.f32 %v1094_v9, %v1093_v7  ;;  %v877_v29 = vmul.f32 %v1987_v46, %v804_v3  ;;  %v879_v7 = vmul.f32 %v1987_v46, %v2073_v2 }
 0x14d   : > { %v949_v60 = vadd.f32 %v2002_v54, %v910_v58 }
 0x14e   : > { %v909_v38 = vadd.f32 %v877_v29, %v713_v45 }
 0x14f   : > { %v1013_v42 = vmul.f32 0.01, %v949_v60  ;;  %vm981_vm7 = vcmp.ge.f32.partialorder %v949_v60, 0.0 }
 0x150   : > { %v948_v31 = vadd.f32 %v2002_v54, %v909_v38  ;;  %v616_v0 = vpop.permute.xlu1 %615 }
 0x151   : > { %v683_v53 = vmul.f32 %v1979_v40, %v616_v0  ;;  %v1045_v4 = vsel %vm981_vm7, %v949_v60, %v1013_v42 }
 0x152   : > { %vm980_vm8 = vcmp.ge.f32.partialorder %v948_v31, 0.0  ;;  %v1012_v15 = vmul.f32 0.01, %v948_v31  ;;  %v1098_v2 = vsel %vm1058_vm1, %v1045_v4, 0.0 }
 0x153   : > { %v715_v28 = vadd.f32 %v683_v53, %v519_v23 }
 0x154   : > { %v1044_v48 = vsel %vm980_vm8, %v948_v31, %v1012_v15  ;;  %v462_v31 = vpop.permute.xlu0 %461 }
 0x155   : > { %v911_v5 = vadd.f32 %v879_v7, %v715_v28  ;;  %v447_v20 = vpop.permute.xlu1 %446  ;;  %v1096_v25 = vsel %vm1058_vm1, %v1044_v48, 0.0  ;;  %v1142_v32 = vpack.c.bf16 %v1044_v48, %v1043_v36  ;;  %v523_v15 = vmul.f32 %v1981_v41, %v462_v31 }
 0x156   : > { %v1097_v8 = vadd.f32 %v1096_v25, %v1095_v52  ;;  %v520_v11 = vmul.f32 %v1981_v41, %v447_v20  ;;  %v883_v20 = vmul.f32 %v1987_v46, %v2077_v14  ;;  %v1167_v14 = vsel %vm1058_vm1, %v1136_v13, 0 }
 0x157   : > { %v950_v6 = vadd.f32 %v2002_v54, %v911_v5  ;;  %1552 = vmatprep.subr.msk.bf16.mxu0 %vm1058_vm1, %v1142_v32  ;;  %v686_v32 = vmul.f32 %v1979_v40, %v2167_v21 }
 0x158   : > { %1496 = vmatpush3.bf16.xpose.msra.mxu0 %v1161_v1  ;;  %v1099_v63 = vadd.f32 %v1098_v2, %v1097_v8 }
 0x159   : > { %v1014_v10 = vmul.f32 0.01, %v950_v6  ;;  %vm982_vm9 = vcmp.ge.f32.partialorder %v950_v6, 0.0 }
 0x15a   : > { %v620_v43 = vpop.permute.xlu1 %619 }
 0x15b   : > { %v1046_v39 = vsel %vm982_vm9, %v950_v6, %v1014_v10  ;;  %v684_v62 = vmul.f32 %v1979_v40, %v620_v43 }
 0x15c   : > { %v1100_v36 = vsel %vm1058_vm1, %v1046_v39, 0.0  ;;  %v1143_v9 = vpack.c.bf16 %v1046_v39, %v1045_v4 }
 0x15d   : > { %v1101_v58 = vadd.f32 %v1100_v36, %v1099_v63  ;;  %v716_v45 = vadd.f32 %v684_v62, %v520_v11 }
 0x15e   : > { %1553 = vmatprep.subr.msk.bf16.mxu0 %vm1058_vm1, %v1143_v9 }
 0x15f   : > { %v452_v3 = vpop.permute.xlu1 %451 }
 0x160   : > { %1498 = vmatpush3.bf16.xpose.msra.mxu0 %v1164_v33  ;;  %v521_v38 = vmul.f32 %v1981_v41, %v452_v3 }
 0x162   : > { %v717_v23 = vadd.f32 %v685_v22, %v521_v38 }
 0x164   : > { %v816_v59 = vpop.permute.xlu1 %815 }
 0x165   : > { %v880_v52 = vmul.f32 %v1987_v46, %v816_v59 }
 0x167   : > { %v912_v29 = vadd.f32 %v880_v52, %v716_v45  ;;  %v884_v52 = vmul.f32 %v1987_v46, %v2083_v24  ;;  %v1170_v24 = vsel %vm1058_vm1, %v1137_v12, 0 }
 0x169   : > { %v951_v57 = vadd.f32 %v2002_v54, %v912_v29  ;;  %v457_v60 = vpop.permute.xlu1 %456 }
 0x16a   : > { %v522_v17 = vmul.f32 %v1981_v41, %v457_v60 }
 0x16b   : > { %v1015_v30 = vmul.f32 0.01, %v951_v57  ;;  %vm983_vm10 = vcmp.ge.f32.partialorder %v951_v57, 0.0 }
 0x16c   : > { %v718_v43 = vadd.f32 %v686_v32, %v522_v17 }
 0x16d   : > { %v1047_v53 = vsel %vm983_vm10, %v951_v57, %v1015_v30 }
 0x16e   : > { %v820_v35 = vpop.permute.xlu1 %819  ;;  %v1102_v4 = vsel %vm1058_vm1, %v1047_v53, 0.0 }
 0x16f   : > { %v881_v42 = vmul.f32 %v1987_v46, %v820_v35  ;;  %v1103_v6 = vadd.f32 %v1102_v4, %v1101_v58  ;;  %v467_v58 = vpop.permute.xlu0 %466 }
 0x170   : > { %v524_v3 = vmul.f32 %v1981_v41, %v467_v58 }
 0x171   : > { %v913_v0 = vadd.f32 %v881_v42, %v717_v23 }
 0x173   : > { %v952_v7 = vadd.f32 %v2002_v54, %v913_v0  ;;  %v632_v28 = vpop.permute.xlu1 %631 }
 0x174   : > { %v687_v48 = vmul.f32 %v1979_v40, %v632_v28 }
 0x175   : > { %vm984_vm11 = vcmp.ge.f32.partialorder %v952_v7, 0.0  ;;  %v1016_v5 = vmul.f32 0.01, %v952_v7 }
 0x176   : > { %v719_v25 = vadd.f32 %v687_v48, %v523_v15 }
 0x177   : > { %v1048_v8 = vsel %vm984_vm11, %v952_v7, %v1016_v5 }
 0x178   : > { %v915_v1 = vadd.f32 %v883_v20, %v719_v25  ;;  %v824_v2 = vpop.permute.xlu1 %823  ;;  %v1104_v63 = vsel %vm1058_vm1, %v1048_v8, 0.0  ;;  %v1144_v10 = vpack.c.bf16 %v1048_v8, %v1047_v53  ;;  %v487_v20 = vpop.permute.xlu0 %486  ;;  %v690_v8 = vmul.f32 %v1979_v40, %v2173_v44 }
 0x179   : > { %v882_v39 = vmul.f32 %v1987_v46, %v824_v2  ;;  %v1105_v36 = vadd.f32 %v1104_v63, %v1103_v6 }
 0x17a   : > { %v954_v9 = vadd.f32 %v2002_v54, %v915_v1  ;;  %1554 = vmatprep.subr.msk.bf16.mxu0 %vm1058_vm1, %v1144_v10 }
 0x17b   : > { %v914_v21 = vadd.f32 %v882_v39, %v718_v43  ;;  %1500 = vmatpush3.bf16.xpose.msra.mxu0 %v1167_v14  ;;  %v1173_v39 = vsel %vm1058_vm1, %v1138_v49, 0 }
 0x17c   : > { %v1018_v33 = vmul.f32 0.01, %v954_v9  ;;  %vm986_vm12 = vcmp.ge.f32.partialorder %v954_v9, 0.0  ;;  %v492_v43 = vpop.permute.xlu0 %491 }
 0x17d   : > { %v953_v62 = vadd.f32 %v2002_v54, %v914_v21  ;;  %v636_v11 = vpop.permute.xlu1 %635 }
 0x17e   : > { %v688_v59 = vmul.f32 %v1979_v40, %v636_v11  ;;  %v1050_v13 = vsel %vm986_vm12, %v954_v9, %v1018_v33 }
 0x17f   : > { %vm985_vm13 = vcmp.ge.f32.partialorder %v953_v62, 0.0  ;;  %v1017_v45 = vmul.f32 0.01, %v953_v62  ;;  %v1108_v35 = vsel %vm1058_vm1, %v1050_v13, 0.0 }
 0x180   : > { %v720_v61 = vadd.f32 %v688_v59, %v524_v3  ;;  %v848_v58 = vpop.permute.xlu0 %847  ;;  %v528_v3 = vmul.f32 %v1981_v41, %v487_v20 }
 0x181   : > { %v1049_v51 = vsel %vm985_vm13, %v953_v62, %v1017_v45  ;;  %v888_v11 = vmul.f32 %v1987_v46, %v848_v58 }
 0x182   : > { %v916_v29 = vadd.f32 %v884_v52, %v720_v61  ;;  %v472_v57 = vpop.permute.xlu1 %471  ;;  %v1106_v60 = vsel %vm1058_vm1, %v1049_v51, 0.0  ;;  %v1145_v38 = vpack.c.bf16 %v1050_v13, %v1049_v51 }
 0x183   : > { %v1107_v22 = vadd.f32 %v1106_v60, %v1105_v36  ;;  %v525_v48 = vmul.f32 %v1981_v41, %v472_v57  ;;  %v1685_v57 = vld [vmem:[%s2474_s2] ss:$0 sm:$0xff] }
 0x184   : > { %v955_v30 = vadd.f32 %v2002_v54, %v916_v29  ;;  %1555 = vmatprep.subr.msk.bf16.mxu0 %vm1058_vm1, %v1145_v38 }
 0x185   : > { %v1109_v23 = vadd.f32 %v1108_v35, %v1107_v22  ;;  %1502 = vmatpush3.bf16.xpose.msra.mxu0 %v1170_v24  ;;  %v529_v35 = vmul.f32 %v1981_v41, %v492_v43 }
 0x186   : > { %v1019_v42 = vmul.f32 0.01, %v955_v30  ;;  %vm987_vm14 = vcmp.ge.f32.partialorder %v955_v30, 0.0 }
 0x187   : > { %v640_v31 = vpop.permute.xlu1 %639 }
 0x188   : > { %v1051_v0 = vsel %vm987_vm14, %v955_v30, %v1019_v42  ;;  %v689_v28 = vmul.f32 %v1979_v40, %v640_v31 }
 0x189   : > { %v1110_v53 = vsel %vm1058_vm1, %v1051_v0, 0.0 }
 0x18a   : > { %v1111_v15 = vadd.f32 %v1110_v53, %v1109_v23  ;;  %v721_v17 = vadd.f32 %v689_v28, %v525_v48 }
 0x18c   : > { %v477_v7 = vpop.permute.xlu1 %476 }
 0x18d   : > { %v526_v25 = vmul.f32 %v1981_v41, %v477_v7 }
 0x18f   : > { %v722_v63 = vadd.f32 %v690_v8, %v526_v25  ;;  %v1057_v8 = vld [vmem:[#allocation2] sm:$0x1] }
 0x191   : > { %v836_v4 = vpop.permute.xlu1 %835 }
 0x192   : > { %v885_v47 = vmul.f32 %v1987_v46, %v836_v4 }
 0x194   : > { %v917_v16 = vadd.f32 %v885_v47, %v721_v17 }
 0x196   : > { %v956_v12 = vadd.f32 %v2002_v54, %v917_v16  ;;  %v482_v5 = vpop.permute.xlu1 %481 }
 0x197   : > { %v527_v33 = vmul.f32 %v1981_v41, %v482_v5 }
 0x198   : > { %vm988_vm15 = vcmp.ge.f32.partialorder %v956_v12, 0.0  ;;  %v1020_v32 = vmul.f32 0.01, %v956_v12 }
 0x199   : > { %v723_v52 = vadd.f32 %v691_v26, %v527_v33 }
 0x19a   : > { %v1052_v6 = vsel %vm988_vm15, %v956_v12, %v1020_v32 }
 0x19b   : > { %v840_v1 = vpop.permute.xlu1 %839  ;;  %v1146_v2 = vpack.c.bf16 %v1052_v6, %v1051_v0  ;;  %v1112_v44 = vsel %vm1058_vm1, %v1052_v6, 0.0 }
 0x19c   : > { %v886_v10 = vmul.f32 %v1987_v46, %v840_v1  ;;  %v1113_v34 = vadd.f32 %v1112_v44, %v1111_v15 }
 0x19d   : > { %1556 = vmatprep.subr.msk.bf16.mxu0 %vm1058_vm1, %v1146_v2 }
 0x19e   : > { %v918_v36 = vadd.f32 %v886_v10, %v722_v63  ;;  %1504 = vmatpush3.bf16.xpose.msra.mxu0 %v1173_v39 }
 0x1a0   : > { %v957_v9 = vadd.f32 %v2002_v54, %v918_v36  ;;  %v652_v14 = vpop.permute.xlu1 %651 }
 0x1a1   : > { %v692_v21 = vmul.f32 %v1979_v40, %v652_v14 }
 0x1a2   : > { %vm989_vm0 = vcmp.ge.f32.partialorder %v957_v9, 0.0  ;;  %v1021_v62 = vmul.f32 0.01, %v957_v9 }
 0x1a3   : > { %v724_v49 = vadd.f32 %v692_v21, %v528_v3 }
 0x1a4   : > { %v1053_v54 = vsel %vm989_vm0, %v957_v9, %v1021_v62 }
 0x1a5   : > { %v844_v59 = vpop.permute.xlu1 %843  ;;  %v1114_v45 = vsel %vm1058_vm1, %v1053_v54, 0.0  ;;  %v920_v13 = vadd.f32 %v888_v11, %v724_v49 }
 0x1a6   : > { %v887_v61 = vmul.f32 %v1987_v46, %v844_v59  ;;  %v1115_v51 = vadd.f32 %v1114_v45, %v1113_v34 }
 0x1a7   : > { %v959_v38 = vadd.f32 %v1685_v57, %v920_v13 }
 0x1a8   : > { %v919_v29 = vadd.f32 %v887_v61, %v723_v52 }
 0x1a9   : > { %v1023_v0 = vmul.f32 0.01, %v959_v38  ;;  %vm991_vm3 = vcmp.ge.f32.partialorder %v959_v38, 0.0 }
 0x1aa   : > { %v958_v60 = vadd.f32 %v1685_v57, %v919_v29  ;;  %v656_v18 = vpop.permute.xlu1 %655 }
 0x1ab   : > { %v693_v30 = vmul.f32 %v1979_v40, %v656_v18  ;;  %v1176_v40 = vsel %vm1058_vm1, %v1139_v50, 0  ;;  %v1055_v48 = vsel %vm991_vm3, %v959_v38, %v1023_v0 }
 0x1ac   : > { %vm990_vm2 = vcmp.ge.f32.partialorder %v958_v60, 0.0  ;;  %v1022_v22 = vmul.f32 0.01, %v958_v60  ;;  %v1118_v17 = vsel %vm1058_vm1, %v1055_v48, 0.0 }
 0x1ad   : > { %v725_v53 = vadd.f32 %v693_v30, %v529_v35 }
 0x1ae   : > { %v1054_v24 = vsel %vm990_vm2, %v958_v60, %v1022_v22 }
 0x1af   : > { %v852_v23 = vpop.permute.xlu1 %851  ;;  %v1116_v42 = vsel %vm1058_vm1, %v1054_v24, 0.0  ;;  %v1147_v31 = vpack.c.bf16 %v1054_v24, %v1053_v54 }
 0x1b0   : > { %v889_v15 = vmul.f32 %v1987_v46, %v852_v23  ;;  %v1117_v7 = vadd.f32 %v1116_v42, %v1115_v51 }
 0x1b1   : > { %1557 = vmatprep.subr.msk.bf16.mxu0 %vm1058_vm1, %v1147_v31 }
 0x1b2   : > { %v921_v28 = vadd.f32 %v889_v15, %v725_v53  ;;  %1506 = vmatpush3.bf16.xpose.msra.mxu0 %v1176_v40  ;;  %v1119_v16 = vadd.f32 %v1118_v17, %v1117_v7 }
 0x1b4   : > { %v960_v41 = vadd.f32 %v1685_v57, %v921_v28 }
 0x1b6   : > { %vm992_vm5 = vcmp.ge.f32.partialorder %v960_v41, 0.0  ;;  %v1024_v4 = vmul.f32 0.01, %v960_v41 }
 0x1b8   : > { %v1056_v47 = vsel %vm992_vm5, %v960_v41, %v1024_v4 }
 0x1b9   : > { %v1120_v46 = vsel %vm1058_vm1, %v1056_v47, 0.0  ;;  %v1148_v12 = vpack.c.bf16 %v1056_v47, %v1055_v48 }
 0x1ba   : > { %v1121_v5 = vadd.f32 %v1120_v46, %v1119_v16 }
 0x1bb   : > { %1558 = vmatprep.subr.msk.bf16.mxu0 %vm1058_vm1, %v1148_v12 }
 0x1bc   : > { %v1122_v37 = vrot.slane %v1121_v5, 4  ;;  %1508 = vmatpush3.bf16.xpose.msra.mxu0 %v1179_v27 }
 0x1be   : > { %v1123_v50 = vadd.f32 %v1122_v37, %v1121_v5 }
 0x1c0   : > { %v1124_v20 = vrot.slane %v1123_v50, 2 }
 0x1c2   : > { %v1125_v25 = vadd.f32 %v1124_v20, %v1123_v50 }
 0x1c3   : > { %1510 = vmatmul.mubr.msk.bf16.vlgmr.msra.gmra.mrb[0].mxu0 %vm1058_vm1, %v1680_v55 }
 0x1c4   : > { %v1126_v32 = vrot.slane %v1125_v25, 1 }
 0x1c6   : > { %v1127_v6 = vadd.f32 %v1126_v32, %v1125_v25 }
 0x1c8   : > { %v1128_v1 = vadd.f32 %v1127_v6, %v1057_v8 }
 0x1ca   : > { %1130 = vst.msk [vmem:[#allocation2] sm:$0x1] %vm299_vm4, %v1128_v1 }
 0x1d1   : > { %v1255_v2 = vld [vmem:[#allocation2] sm:$0x1] }
 0x1d2   : > { %1537 = vmatmul.mubr.msk.f32.vlgmr.msra.gmra.mrb[0].mxu1 %vm1058_vm1, %v1255_v2 }
 0x296   : > { %v1239_v14 = vpop.f32.mrb[0].mxu0 }
 0x297   : > { %v1241_v44 = vpop.f32.mrb[1].mxu0  ;;  %1248 = vst [vmem:[%s292_s16] sm:$0xff] %v1239_v14 }
 0x298   : > { %v1243_v21 = vpop.f32.mrb[2].mxu0  ;;  %1249 = vst [vmem:[%s292_s16 + $0x8] sm:$0xff] %v1241_v44 }
 0x299   : > { %v1245_v58 = vpop.f32.mrb[3].mxu0  ;;  %1250 = vst [vmem:[%s292_s16 + $0x10] sm:$0xff] %v1243_v21 }
 0x29a   : > { %1251 = vst [vmem:[%s292_s16 + $0x18] sm:$0xff] %v1245_v58 }
 0x2a5   : > { %v1333_v56 = vpop.f32.mrb[0].mxu1 }
 0x2a6   : > { %v1538_v19 = vpop.f32.mrb[1].mxu1  ;;  %v1338_v63 = vsel %vm1337_vm6, %v1333_v56, -inf }
 0x2a7   : > { %1339 = vmax.xlane.f32.xlu1 %v1338_v63 }
 0x334   : > { %v1340_v10 = vpop.xlane.xlu1 %1339 }
 0x335   : > { %v1341_v43 = vsub.f32 %v1333_v56, %v1340_v10 }
 0x337   : > { %v1342_v39 = vmul.f32 1.442695, %v1341_v43 }
 0x339   : > { %1681 = vpow2.f32 %v1342_v39 }
 0x343   : > { %v1682_v36 = vpop.eup %1681 }
 0x344   : > { %v1344_v9 = vsel %vm1337_vm6, %v1682_v36, 0.0 }
 0x345   : > { %1345 = vadd.xlane.f32.xlu0 %v1344_v9 }
 0x3d2   : > { %v1346_v3 = vpop.xlane.xlu0 %1345 }
 0x3d3   : > { %1683 = vrcp.f32 %v1346_v3 }
 0x3dd   : > { %v1684_v33 = vpop.eup %1683 }
 0x3de   : > { %v1348_v62 = vmul.f32 %v1684_v33, %v1682_v36 }
 0x3e0   : > { %1349 = vst.msk [vmem:[%s264_s19] sm:$0x1] %vm1337_vm6, %v1348_v62 }
 0x3e1   : > { %1699 = shalt.err (!%p1696_p6)
}
 0x3e2   : > { %s1700_s14 = scalar_lea.hbm %s2424_s30, 16  ;;  %s1704_s17 = scalar_lea.hbm %s2477_s5, 32 }
 0x3e3   : > { %p1701_p7 = scmp.ne.s32.totalorder %s2424_s30, %s1700_s14  ;;  %p1705_p11 = scmp.lt.u32.totalorder %s2424_s30, %s2477_s5 }
 0x3e4   : > { %p1706_p12 = scmp.lt.u32.totalorder %s1704_s17, %s1700_s14  ;;  %p1708_p0 = scmp.lt.u32.totalorder %s1700_s14, %s2424_s30 }
 0x3e5   : > { %p1702_p9 = pnand %p1701_p7, %p1848_p4 }
 0x3e6   : > { %p1707_p13 = por %p1706_p12, %p1705_p11 }
 0x3e7   : > { %p1703_p10 = pneg %p1702_p9 }
 0x3e8   : > { %p1709_p1 = por %p1708_p0, %p1707_p13 }
 0x3ea   : > { %p1710_p2 = pnand %p1709_p1, %p1703_p10 }
 0x3ec   : > { %1713 = shalt.err (!%p1710_p2)
}
 0x3ed   : > { %1559 = dma.vmem_to_hbm [thread:$0]  (%p1848_p4), %s2426_s20, 16, %s2424_s30, %s1351_s8  }
 0x3ee PF: > { %p1565_p3 = scmp.ge.s32.totalorder %s1764_s26, 2  ;;  %s1388_s27 = sand.u32 1, %s1744_s21  }
 0x3ef   : > { %s1389_s28 = scalar_lea.sflag [#allocation4], %s1388_s27 }
 0x3f0   : > { %p1562_p5 = pnand %p1565_p3, %p1855_p8 }
 0x3f2   : > { %1739 = dma.done.wait (!%p1562_p5), %s1389_s28, 16  }
 0x3f3   : > { %1741 = vsyncadd (!%p1562_p5), %s1389_s28, 4294967280  ;;  %s20_s26 = sadd.s32 1, %s1764_s26   ;;  %s2481_s21 = smov %s1748_s22 }
 0x3f4   : > { %p17_p6 = scmp.ge.s32.totalorder %s20_s26, 4   ;;  %s2482_s22 = smov %s1752_s23 }
 0x3f5   : > { %s2483_s23 = smov %s1861_s10  ;;  %s2484_s24 = smov %s1760_s25 }
 0x3f6   : > { %s2485_s25 = smov %s2487_s29  ;;  %19 = sbr.rel (!%p17_p6) target bundleno = 4 (0x4), region = 95 }
 0x3fd   :  { %1405 = vsyncpa [#allocation4], 1 }
 0x3fe   :  { %1407 = vsyncpa [#allocation4 + $0x1], 1 }

</bundles_post_ra>
